<compile_context>
chip_gen: v7x
topology: tpu7x:2x2x1
jax: 0.10.0
libtpu: 0.0.40
codegen_flags: <defaults>
</compile_context>

<pallas_src>
import functools

import jax
import jax.numpy as jnp
from jax.experimental import pallas as pl
from jax.experimental.pallas import tpu as pltpu


# ----------------------------------- Pallas kernel ----------------------------

def mha_kernel(q_ref, k_ref, v_ref, bias_ref, w_ref, b_ref,
               out_ref, attn_ref, *, n_heads, head_dim):
    bf = jnp.bfloat16
    nb, Tq, H = q_ref.shape          # batch tile, query length, hidden
    Tk = k_ref.shape[1]

    # ---- Q/K/V projections over the whole batch tile (fat MXU matmuls). ----
    # w_ref: [4, H, H] bf16 packed (q, k, v, o); b_ref: [4, 1, H] f32.
    # fc_q weight/bias are pre-scaled by 1/sqrt(head_dim) on the host, so no
    # in-kernel score scaling is needed.
    xq = q_ref[...].reshape(nb * Tq, H).astype(bf)
    xk = k_ref[...].reshape(nb * Tk, H).astype(bf)
    xv = v_ref[...].reshape(nb * Tk, H).astype(bf)

    Q = jnp.dot(xq, w_ref[0], preferred_element_type=jnp.float32) + b_ref[0]
    K = jnp.dot(xk, w_ref[1], preferred_element_type=jnp.float32) + b_ref[1]
    V = jnp.dot(xv, w_ref[2], preferred_element_type=jnp.float32) + b_ref[2]

    Q4 = Q.reshape(nb, Tq, n_heads, head_dim)
    K4 = K.reshape(nb, Tk, n_heads, head_dim)
    V4 = V.reshape(nb, Tk, n_heads, head_dim)

    # ---- attention core, heads-leading, per batch element (static unroll). -
    # nb is a small static batch tile; all heads of one batch element are
    # contracted in a single batched matmul.
    # TODO(synk): for long sequences this whole-sequence softmax should become
    # a flash-style Tk-tiled online softmax (VMEM pressure, esp. v7x 64 MiB).
    ctx_rows = []
    for bi in range(nb):
        Qh = jnp.transpose(Q4[bi], (1, 0, 2)).astype(bf)    # [h, Tq, d]
        Kh = jnp.transpose(K4[bi], (1, 0, 2)).astype(bf)    # [h, Tk, d]
        Vh = jnp.transpose(V4[bi], (1, 0, 2)).astype(bf)    # [h, Tk, d]

        # Scores for all heads at once, f32 accumulation.
        e = jnp.einsum('hqd,hkd->hqk', Qh, Kh,
                       preferred_element_type=jnp.float32)  # [h, Tq, Tk]
        e = e + bias_ref[bi][None, :, :]      # additive mask bias (0 / -1e10)

        # Numerically stable softmax in f32 over the key axis.
        m = jnp.max(e, axis=-1, keepdims=True)
        p = jnp.exp(e - m)
        s = jnp.sum(p, axis=-1, keepdims=True)
        a = p * pl.reciprocal(s, approx=True)               # [h, Tq, Tk] f32

        # Heads-leading, lane-dense (Tk) store -- matches the [B, h, Tq, Tk]
        # output layout directly, no wrapper transpose pass over HBM.
        attn_ref[bi] = a.astype(attn_ref.dtype)

        # Context: batched PV matmul over all heads, merge heads back to H.
        c = jnp.einsum('hqk,hkd->hqd', a.astype(bf), Vh,
                       preferred_element_type=jnp.float32)  # [h, Tq, d]
        ctx_rows.append(jnp.transpose(c, (1, 0, 2)).reshape(Tq, H))

    ctx = jnp.concatenate(ctx_rows, axis=0).astype(bf)      # [nb*Tq, H]

    # ---- output projection over the whole batch tile. ----------------------
    out = jnp.dot(ctx, w_ref[3], preferred_element_type=jnp.float32) + b_ref[3]
    out_ref[...] = out.reshape(nb, Tq, H)


# ----------------------------------- wrapper ----------------------------------

def mha_forward(query, key, value, mask, params, *, n_heads,
                b_tile=None, attn_dtype=jnp.bfloat16):
    """MultiHeadAttentionLayer forward as a single pallas_call.

    b_tile: batch rows per grid step. Default = whole batch (single grid step;
    best on v5e/v6e with 1 TensorCore). On v7x pass b_tile = B // 2 to keep a
    2-wide "parallel" grid axis so both TensorCores are used.
    """
    B, Tq, H = query.shape
    Tk = key.shape[1]
    assert H % n_heads == 0
    head_dim = H // n_heads

    if b_tile is None:
        b_tile = B
    assert B % b_tile == 0
    n_steps = B // b_tile

    inv_scale = 1.0 / (float(head_dim) ** 0.5)

    # Pack weights [4,H,H] bf16 (MXU operands) and biases [4,1,H] f32 (added
    # after f32 accumulation); fold the 1/sqrt(head_dim) score scale into fc_q.
    w_packed = jnp.stack([params["wq"] * inv_scale, params["wk"],
                          params["wv"], params["wo"]], axis=0
                         ).astype(jnp.bfloat16)
    b_packed = jnp.stack([params["bq"] * inv_scale, params["bk"],
                          params["bv"], params["bo"]], axis=0
                         ).reshape(4, 1, H).astype(jnp.float32)

    # Additive mask bias: 0 where mask==1, -1e10 where mask==0 (matches
    # masked_fill(-1e10) semantics; scores are tiny vs 1e10 in f32).
    bias = ((mask.astype(jnp.float32) - 1.0) * jnp.float32(1e10))

    def batched(shape):
        rest = len(shape) - 1
        return pl.BlockSpec((b_tile,) + tuple(shape[1:]),
                            lambda i, _r=rest: (i,) + (0,) * _r)

    def shared(shape):
        nd = len(shape)
        return pl.BlockSpec(tuple(shape), lambda i, _n=nd: (0,) * _n)

    in_specs = [batched(query.shape), batched(key.shape),
                batched(value.shape), batched(bias.shape),
                shared(w_packed.shape), shared(b_packed.shape)]
    out_shape = (jax.ShapeDtypeStruct((B, Tq, H), jnp.float32),
                 jax.ShapeDtypeStruct((B, n_heads, Tq, Tk), attn_dtype))
    out_specs = (batched((B, Tq, H)),
                 pl.BlockSpec((b_tile, n_heads, Tq, Tk),
                              lambda i: (i, 0, 0, 0)))

    kernel = functools.partial(mha_kernel, n_heads=n_heads, head_dim=head_dim)

    out, attn = pl.pallas_call(
        kernel,
        grid=(n_steps,),
        in_specs=in_specs,
        out_specs=out_specs,
        out_shape=out_shape,
        compiler_params=pltpu.CompilerParams(
            dimension_semantics=("parallel",)),
    )(query, key, value, bias, w_packed, b_packed)

    return out, attn


# ----------------------------------- reference (pure JAX, f32) ----------------

def mha_reference(query, key, value, mask, params, *, n_heads):
    B, Tq, H = query.shape
    Tk = key.shape[1]
    hd = H // n_heads
    Q = jnp.dot(query, params["wq"]) + params["bq"]
    K = jnp.dot(key, params["wk"]) + params["bk"]
    V = jnp.dot(value, params["wv"]) + params["bv"]
    Qh = Q.reshape(B, Tq, n_heads, hd).transpose(0, 2, 1, 3)
    Kh = K.reshape(B, Tk, n_heads, hd).transpose(0, 2, 1, 3)
    Vh = V.reshape(B, Tk, n_heads, hd).transpose(0, 2, 1, 3)
    e = jnp.einsum('bhqd,bhkd->bhqk', Qh, Kh) / (jnp.float32(hd) ** 0.5)
    e = jnp.where(mask[:, None, :, :] == 0.0, jnp.float32(-1e10), e)
    a = jax.nn.softmax(e, axis=-1)
    x = jnp.einsum('bhqk,bhkd->bhqd', a, Vh)
    x = x.transpose(0, 2, 1, 3).reshape(B, Tq, H)
    x = jnp.dot(x, params["wo"]) + params["bo"]
    return x, a


# ----------------------------------- params -----------------------------------

def init_params(key, hid_dim):
    names = ["wq", "bq", "wk", "bk", "wv", "bv", "wo", "bo"]
    shapes = {"wq": (hid_dim, hid_dim), "bq": (hid_dim,),
              "wk": (hid_dim, hid_dim), "bk": (hid_dim,),
              "wv": (hid_dim, hid_dim), "bv": (hid_dim,),
              "wo": (hid_dim, hid_dim), "bo": (hid_dim,)}
    keys = jax.random.split(key, len(names))
    return {n: 0.05 * jax.random.normal(k, shapes[n], dtype=jnp.float32)
            for n, k in zip(names, keys)}


# ----------------------------------- main --------------------------------------

if __name__ == "__main__":
    # TODO(synk): nn.Dropout is identity here (eval-mode / inference semantics).
    B, Tq, Tk = 2, 8, 8
    HID_DIM, N_HEADS = 32, 4

    root = jax.random.PRNGKey(0)
    k_p, k_q, k_k, k_v = jax.random.split(root, 4)

    params = init_params(k_p, HID_DIM)
    query = jax.random.normal(k_q, (B, Tq, HID_DIM), dtype=jnp.float32)
    key_in = jax.random.normal(k_k, (B, Tk, HID_DIM), dtype=jnp.float32)
    value = jax.random.normal(k_v, (B, Tk, HID_DIM), dtype=jnp.float32)
    # causal mask [B, Tq, Tk] (1 = keep, 0 = masked)
    mask = jnp.broadcast_to(jnp.tril(jnp.ones((Tq, Tk), jnp.float32)),
                            (B, Tq, Tk))

    out, attn = mha_forward(query, key_in, value, mask, params,
                            n_heads=N_HEADS)
    jax.block_until_ready((out, attn))

    ref_out, ref_attn = mha_reference(query, key_in, value, mask, params,
                                      n_heads=N_HEADS)
    assert out.shape == (B, Tq, HID_DIM)
    assert attn.shape == (B, N_HEADS, Tq, Tk)
    # bf16 MXU inputs with f32 accumulation vs. pure-f32 reference
    assert jnp.allclose(out, ref_out, atol=5e-3, rtol=5e-3)
    # attention probabilities are emitted in bf16
    assert jnp.allclose(attn.astype(jnp.float32), ref_attn,
                        atol=1e-2, rtol=1e-2)

    print("KERNEL_OK")
</pallas_src>

<mosaic_0001>
module attributes {stable_mosaic.version = 11 : i64} {
  func.func @mha_kernel(%arg0: i32, %arg1: memref<2x8x32xf32, #tpu.memory_space<vmem>>, %arg2: memref<2x8x32xf32, #tpu.memory_space<vmem>>, %arg3: memref<2x8x32xf32, #tpu.memory_space<vmem>>, %arg4: memref<2x8x8xf32, #tpu.memory_space<vmem>>, %arg5: memref<4x32x32xbf16, #tpu.memory_space<vmem>>, %arg6: memref<4x1x32xf32, #tpu.memory_space<vmem>>, %arg7: memref<2x8x32xf32, #tpu.memory_space<vmem>>, %arg8: memref<2x4x8x8xbf16, #tpu.memory_space<vmem>>) attributes {dimension_semantics = [#tpu.dimension_semantics<parallel>], iteration_bounds = array<i64: 1>, scalar_prefetch = 0 : i64, scratch_operands = 0 : i64, tpu.core_type = #tpu.core_type<tc>, window_params = [{transform_indices = @transform_0, window_bounds = array<i64: 2, 8, 32>}, {transform_indices = @transform_1, window_bounds = array<i64: 2, 8, 32>}, {transform_indices = @transform_2, window_bounds = array<i64: 2, 8, 32>}, {transform_indices = @transform_3, window_bounds = array<i64: 2, 8, 8>}, {pipeline_mode = #tpu.pipeline_mode<synchronous>, transform_indices = @transform_4, window_bounds = array<i64: 4, 32, 32>}, {pipeline_mode = #tpu.pipeline_mode<synchronous>, transform_indices = @transform_5, window_bounds = array<i64: 4, 1, 32>}, {transform_indices = @transform_6, window_bounds = array<i64: 2, 8, 32>}, {transform_indices = @transform_7, window_bounds = array<i64: 2, 4, 8, 8>}]} {
    %c0 = arith.constant 0 : index
    %c0_0 = arith.constant 0 : index
    %c0_1 = arith.constant 0 : index
    %0 = vector.load %arg1[%c0, %c0_0, %c0_1] : memref<2x8x32xf32, #tpu.memory_space<vmem>>, vector<2x8x32xf32>
    %1 = vector.shape_cast %0 : vector<2x8x32xf32> to vector<16x32xf32>
    %2 = arith.truncf %1 : vector<16x32xf32> to vector<16x32xbf16>
    %c0_2 = arith.constant 0 : index
    %c0_3 = arith.constant 0 : index
    %c0_4 = arith.constant 0 : index
    %3 = vector.load %arg2[%c0_2, %c0_3, %c0_4] : memref<2x8x32xf32, #tpu.memory_space<vmem>>, vector<2x8x32xf32>
    %4 = vector.shape_cast %3 : vector<2x8x32xf32> to vector<16x32xf32>
    %5 = arith.truncf %4 : vector<16x32xf32> to vector<16x32xbf16>
    %c0_5 = arith.constant 0 : index
    %c0_6 = arith.constant 0 : index
    %c0_7 = arith.constant 0 : index
    %6 = vector.load %arg3[%c0_5, %c0_6, %c0_7] : memref<2x8x32xf32, #tpu.memory_space<vmem>>, vector<2x8x32xf32>
    %7 = vector.shape_cast %6 : vector<2x8x32xf32> to vector<16x32xf32>
    %8 = arith.truncf %7 : vector<16x32xf32> to vector<16x32xbf16>
    %c0_8 = arith.constant 0 : index
    %c0_9 = arith.constant 0 : index
    %c0_10 = arith.constant 0 : index
    %9 = vector.load %arg5[%c0_8, %c0_9, %c0_10] : memref<4x32x32xbf16, #tpu.memory_space<vmem>>, vector<1x32x32xbf16>
    %10 = vector.shape_cast %9 : vector<1x32x32xbf16> to vector<32x32xbf16>
    %cst = arith.constant dense<0.000000e+00> : vector<16x32xf32>
    %11 = tpu.matmul %2, %10, %cst {dimension_numbers = #tpu.dot_dimension_numbers<[1], [0], [0], [1], [0, 0, 1, 1], [], []>} : vector<16x32xbf16>, vector<32x32xbf16>, vector<16x32xf32> -> vector<16x32xf32>
    %c0_11 = arith.constant 0 : index
    %c0_12 = arith.constant 0 : index
    %c0_13 = arith.constant 0 : index
    %12 = vector.load %arg6[%c0_11, %c0_12, %c0_13] : memref<4x1x32xf32, #tpu.memory_space<vmem>>, vector<1x1x32xf32>
    %13 = vector.shape_cast %12 : vector<1x1x32xf32> to vector<1x32xf32>
    %14 = vector.broadcast %13 : vector<1x32xf32> to vector<16x32xf32>
    %15 = arith.addf %11, %14 : vector<16x32xf32>
    %c1 = arith.constant 1 : index
    %c0_14 = arith.constant 0 : index
    %c0_15 = arith.constant 0 : index
    %16 = vector.load %arg5[%c1, %c0_14, %c0_15] : memref<4x32x32xbf16, #tpu.memory_space<vmem>>, vector<1x32x32xbf16>
    %17 = vector.shape_cast %16 : vector<1x32x32xbf16> to vector<32x32xbf16>
    %cst_16 = arith.constant dense<0.000000e+00> : vector<16x32xf32>
    %18 = tpu.matmul %5, %17, %cst_16 {dimension_numbers = #tpu.dot_dimension_numbers<[1], [0], [0], [1], [0, 0, 1, 1], [], []>} : vector<16x32xbf16>, vector<32x32xbf16>, vector<16x32xf32> -> vector<16x32xf32>
    %c1_17 = arith.constant 1 : index
    %c0_18 = arith.constant 0 : index
    %c0_19 = arith.constant 0 : index
    %19 = vector.load %arg6[%c1_17, %c0_18, %c0_19] : memref<4x1x32xf32, #tpu.memory_space<vmem>>, vector<1x1x32xf32>
    %20 = vector.shape_cast %19 : vector<1x1x32xf32> to vector<1x32xf32>
    %21 = vector.broadcast %20 : vector<1x32xf32> to vector<16x32xf32>
    %22 = arith.addf %18, %21 : vector<16x32xf32>
    %c2 = arith.constant 2 : index
    %c0_20 = arith.constant 0 : index
    %c0_21 = arith.constant 0 : index
    %23 = vector.load %arg5[%c2, %c0_20, %c0_21] : memref<4x32x32xbf16, #tpu.memory_space<vmem>>, vector<1x32x32xbf16>
    %24 = vector.shape_cast %23 : vector<1x32x32xbf16> to vector<32x32xbf16>
    %cst_22 = arith.constant dense<0.000000e+00> : vector<16x32xf32>
    %25 = tpu.matmul %8, %24, %cst_22 {dimension_numbers = #tpu.dot_dimension_numbers<[1], [0], [0], [1], [0, 0, 1, 1], [], []>} : vector<16x32xbf16>, vector<32x32xbf16>, vector<16x32xf32> -> vector<16x32xf32>
    %c2_23 = arith.constant 2 : index
    %c0_24 = arith.constant 0 : index
    %c0_25 = arith.constant 0 : index
    %26 = vector.load %arg6[%c2_23, %c0_24, %c0_25] : memref<4x1x32xf32, #tpu.memory_space<vmem>>, vector<1x1x32xf32>
    %27 = vector.shape_cast %26 : vector<1x1x32xf32> to vector<1x32xf32>
    %28 = vector.broadcast %27 : vector<1x32xf32> to vector<16x32xf32>
    %29 = arith.addf %25, %28 : vector<16x32xf32>
    %30 = vector.shape_cast %15 : vector<16x32xf32> to vector<2x8x4x8xf32>
    %31 = vector.shape_cast %22 : vector<16x32xf32> to vector<2x8x4x8xf32>
    %32 = vector.shape_cast %29 : vector<16x32xf32> to vector<2x8x4x8xf32>
    %33 = vector.extract_strided_slice %30 {offsets = [0, 0, 0, 0], sizes = [1, 8, 4, 8], strides = [1, 1, 1, 1]} : vector<2x8x4x8xf32> to vector<1x8x4x8xf32>
    %34 = vector.shape_cast %33 : vector<1x8x4x8xf32> to vector<8x4x8xf32>
    %35 = tpu.transpose %34, [1, 0, 2] : vector<8x4x8xf32> -> vector<4x8x8xf32>
    %36 = arith.truncf %35 : vector<4x8x8xf32> to vector<4x8x8xbf16>
    %37 = vector.extract_strided_slice %31 {offsets = [0, 0, 0, 0], sizes = [1, 8, 4, 8], strides = [1, 1, 1, 1]} : vector<2x8x4x8xf32> to vector<1x8x4x8xf32>
    %38 = vector.shape_cast %37 : vector<1x8x4x8xf32> to vector<8x4x8xf32>
    %39 = tpu.transpose %38, [1, 0, 2] : vector<8x4x8xf32> -> vector<4x8x8xf32>
    %40 = arith.truncf %39 : vector<4x8x8xf32> to vector<4x8x8xbf16>
    %41 = vector.extract_strided_slice %32 {offsets = [0, 0, 0, 0], sizes = [1, 8, 4, 8], strides = [1, 1, 1, 1]} : vector<2x8x4x8xf32> to vector<1x8x4x8xf32>
    %42 = vector.shape_cast %41 : vector<1x8x4x8xf32> to vector<8x4x8xf32>
    %43 = tpu.transpose %42, [1, 0, 2] : vector<8x4x8xf32> -> vector<4x8x8xf32>
    %44 = arith.truncf %43 : vector<4x8x8xf32> to vector<4x8x8xbf16>
    "tpu.trace_start"() <{level = 10 : i32, message = "hqd,hkd->hqk"}> : () -> ()
    %cst_26 = arith.constant dense<0.000000e+00> : vector<4x8x8xf32>
    %45 = tpu.matmul %36, %40, %cst_26 {dimension_numbers = #tpu.dot_dimension_numbers<[2], [2], [1], [1], [0, 0, 0, 1, 1, 1], [0], [0]>} : vector<4x8x8xbf16>, vector<4x8x8xbf16>, vector<4x8x8xf32> -> vector<4x8x8xf32>
    "tpu.trace_stop"() : () -> ()
    %c0_27 = arith.constant 0 : index
    %c0_28 = arith.constant 0 : index
    %c0_29 = arith.constant 0 : index
    %46 = vector.load %arg4[%c0_27, %c0_28, %c0_29] : memref<2x8x8xf32, #tpu.memory_space<vmem>>, vector<1x8x8xf32>
    %47 = vector.shape_cast %46 : vector<1x8x8xf32> to vector<8x8xf32>
    %48 = vector.shape_cast %47 : vector<8x8xf32> to vector<1x8x8xf32>
    %49 = vector.broadcast %48 : vector<1x8x8xf32> to vector<4x8x8xf32>
    %50 = arith.addf %45, %49 : vector<4x8x8xf32>
    %cst_30 = arith.constant dense<0xFF800000> : vector<4x8xf32>
    %51 = vector.multi_reduction <maximumf>, %50, %cst_30 [2] : vector<4x8x8xf32> to vector<4x8xf32>
    %52 = vector.shape_cast %51 : vector<4x8xf32> to vector<4x8x1xf32>
    %53 = vector.broadcast %52 : vector<4x8x1xf32> to vector<4x8x8xf32>
    %54 = arith.subf %50, %53 : vector<4x8x8xf32>
    %55 = math.exp %54 : vector<4x8x8xf32>
    %cst_31 = arith.constant dense<0.000000e+00> : vector<4x8xf32>
    %56 = vector.multi_reduction <add>, %55, %cst_31 [2] : vector<4x8x8xf32> to vector<4x8xf32>
    %57 = vector.shape_cast %56 : vector<4x8xf32> to vector<4x8x1xf32>
    %58 = tpu.reciprocal %57 {approx = true} : vector<4x8x1xf32> -> vector<4x8x1xf32>
    %59 = vector.broadcast %58 : vector<4x8x1xf32> to vector<4x8x8xf32>
    %60 = arith.mulf %55, %59 : vector<4x8x8xf32>
    %61 = arith.truncf %60 : vector<4x8x8xf32> to vector<4x8x8xbf16>
    %c0_32 = arith.constant 0 : index
    %c0_33 = arith.constant 0 : index
    %c0_34 = arith.constant 0 : index
    %c0_35 = arith.constant 0 : index
    %62 = vector.load %arg8[%c0_32, %c0_33, %c0_34, %c0_35] : memref<2x4x8x8xbf16, #tpu.memory_space<vmem>>, vector<1x4x8x8xbf16>
    %63 = vector.shape_cast %62 : vector<1x4x8x8xbf16> to vector<4x8x8xbf16>
    %64 = vector.shape_cast %61 : vector<4x8x8xbf16> to vector<1x4x8x8xbf16>
    tpu.vector_store %arg8[%c0_32, %c0_33, %c0_34, %c0_35], %64 {strides = array<i32>} : memref<2x4x8x8xbf16, #tpu.memory_space<vmem>>, vector<1x4x8x8xbf16>,
    %65 = arith.truncf %60 : vector<4x8x8xf32> to vector<4x8x8xbf16>
    "tpu.trace_start"() <{level = 10 : i32, message = "hqk,hkd->hqd"}> : () -> ()
    %cst_36 = arith.constant dense<0.000000e+00> : vector<4x8x8xf32>
    %66 = tpu.matmul %65, %44, %cst_36 {dimension_numbers = #tpu.dot_dimension_numbers<[2], [1], [1], [2], [0, 0, 0, 1, 1, 2], [0], [0]>} : vector<4x8x8xbf16>, vector<4x8x8xbf16>, vector<4x8x8xf32> -> vector<4x8x8xf32>
    "tpu.trace_stop"() : () -> ()
    %67 = tpu.transpose %66, [1, 0, 2] : vector<4x8x8xf32> -> vector<8x4x8xf32>
    %68 = vector.shape_cast %67 : vector<8x4x8xf32> to vector<8x32xf32>
    %69 = vector.extract_strided_slice %30 {offsets = [1, 0, 0, 0], sizes = [1, 8, 4, 8], strides = [1, 1, 1, 1]} : vector<2x8x4x8xf32> to vector<1x8x4x8xf32>
    %70 = vector.shape_cast %69 : vector<1x8x4x8xf32> to vector<8x4x8xf32>
    %71 = tpu.transpose %70, [1, 0, 2] : vector<8x4x8xf32> -> vector<4x8x8xf32>
    %72 = arith.truncf %71 : vector<4x8x8xf32> to vector<4x8x8xbf16>
    %73 = vector.extract_strided_slice %31 {offsets = [1, 0, 0, 0], sizes = [1, 8, 4, 8], strides = [1, 1, 1, 1]} : vector<2x8x4x8xf32> to vector<1x8x4x8xf32>
    %74 = vector.shape_cast %73 : vector<1x8x4x8xf32> to vector<8x4x8xf32>
    %75 = tpu.transpose %74, [1, 0, 2] : vector<8x4x8xf32> -> vector<4x8x8xf32>
    %76 = arith.truncf %75 : vector<4x8x8xf32> to vector<4x8x8xbf16>
    %77 = vector.extract_strided_slice %32 {offsets = [1, 0, 0, 0], sizes = [1, 8, 4, 8], strides = [1, 1, 1, 1]} : vector<2x8x4x8xf32> to vector<1x8x4x8xf32>
    %78 = vector.shape_cast %77 : vector<1x8x4x8xf32> to vector<8x4x8xf32>
    %79 = tpu.transpose %78, [1, 0, 2] : vector<8x4x8xf32> -> vector<4x8x8xf32>
    %80 = arith.truncf %79 : vector<4x8x8xf32> to vector<4x8x8xbf16>
    "tpu.trace_start"() <{level = 10 : i32, message = "hqd,hkd->hqk"}> : () -> ()
    %cst_37 = arith.constant dense<0.000000e+00> : vector<4x8x8xf32>
    %81 = tpu.matmul %72, %76, %cst_37 {dimension_numbers = #tpu.dot_dimension_numbers<[2], [2], [1], [1], [0, 0, 0, 1, 1, 1], [0], [0]>} : vector<4x8x8xbf16>, vector<4x8x8xbf16>, vector<4x8x8xf32> -> vector<4x8x8xf32>
    "tpu.trace_stop"() : () -> ()
    %c1_38 = arith.constant 1 : index
    %c0_39 = arith.constant 0 : index
    %c0_40 = arith.constant 0 : index
    %82 = vector.load %arg4[%c1_38, %c0_39, %c0_40] : memref<2x8x8xf32, #tpu.memory_space<vmem>>, vector<1x8x8xf32>
    %83 = vector.shape_cast %82 : vector<1x8x8xf32> to vector<8x8xf32>
    %84 = vector.shape_cast %83 : vector<8x8xf32> to vector<1x8x8xf32>
    %85 = vector.broadcast %84 : vector<1x8x8xf32> to vector<4x8x8xf32>
    %86 = arith.addf %81, %85 : vector<4x8x8xf32>
    %cst_41 = arith.constant dense<0xFF800000> : vector<4x8xf32>
    %87 = vector.multi_reduction <maximumf>, %86, %cst_41 [2] : vector<4x8x8xf32> to vector<4x8xf32>
    %88 = vector.shape_cast %87 : vector<4x8xf32> to vector<4x8x1xf32>
    %89 = vector.broadcast %88 : vector<4x8x1xf32> to vector<4x8x8xf32>
    %90 = arith.subf %86, %89 : vector<4x8x8xf32>
    %91 = math.exp %90 : vector<4x8x8xf32>
    %cst_42 = arith.constant dense<0.000000e+00> : vector<4x8xf32>
    %92 = vector.multi_reduction <add>, %91, %cst_42 [2] : vector<4x8x8xf32> to vector<4x8xf32>
    %93 = vector.shape_cast %92 : vector<4x8xf32> to vector<4x8x1xf32>
    %94 = tpu.reciprocal %93 {approx = true} : vector<4x8x1xf32> -> vector<4x8x1xf32>
    %95 = vector.broadcast %94 : vector<4x8x1xf32> to vector<4x8x8xf32>
    %96 = arith.mulf %91, %95 : vector<4x8x8xf32>
    %97 = arith.truncf %96 : vector<4x8x8xf32> to vector<4x8x8xbf16>
    %c1_43 = arith.constant 1 : index
    %c0_44 = arith.constant 0 : index
    %c0_45 = arith.constant 0 : index
    %c0_46 = arith.constant 0 : index
    %98 = vector.load %arg8[%c1_43, %c0_44, %c0_45, %c0_46] : memref<2x4x8x8xbf16, #tpu.memory_space<vmem>>, vector<1x4x8x8xbf16>
    %99 = vector.shape_cast %98 : vector<1x4x8x8xbf16> to vector<4x8x8xbf16>
    %100 = vector.shape_cast %97 : vector<4x8x8xbf16> to vector<1x4x8x8xbf16>
    tpu.vector_store %arg8[%c1_43, %c0_44, %c0_45, %c0_46], %100 {strides = array<i32>} : memref<2x4x8x8xbf16, #tpu.memory_space<vmem>>, vector<1x4x8x8xbf16>,
    %101 = arith.truncf %96 : vector<4x8x8xf32> to vector<4x8x8xbf16>
    "tpu.trace_start"() <{level = 10 : i32, message = "hqk,hkd->hqd"}> : () -> ()
    %cst_47 = arith.constant dense<0.000000e+00> : vector<4x8x8xf32>
    %102 = tpu.matmul %101, %80, %cst_47 {dimension_numbers = #tpu.dot_dimension_numbers<[2], [1], [1], [2], [0, 0, 0, 1, 1, 2], [0], [0]>} : vector<4x8x8xbf16>, vector<4x8x8xbf16>, vector<4x8x8xf32> -> vector<4x8x8xf32>
    "tpu.trace_stop"() : () -> ()
    %103 = tpu.transpose %102, [1, 0, 2] : vector<4x8x8xf32> -> vector<8x4x8xf32>
    %104 = vector.shape_cast %103 : vector<8x4x8xf32> to vector<8x32xf32>
    %105 = tpu.concatenate %68, %104 in 0 : vector<8x32xf32>, vector<8x32xf32> -> vector<16x32xf32>
    %106 = arith.truncf %105 : vector<16x32xf32> to vector<16x32xbf16>
    %c3 = arith.constant 3 : index
    %c0_48 = arith.constant 0 : index
    %c0_49 = arith.constant 0 : index
    %107 = vector.load %arg5[%c3, %c0_48, %c0_49] : memref<4x32x32xbf16, #tpu.memory_space<vmem>>, vector<1x32x32xbf16>
    %108 = vector.shape_cast %107 : vector<1x32x32xbf16> to vector<32x32xbf16>
    %cst_50 = arith.constant dense<0.000000e+00> : vector<16x32xf32>
    %109 = tpu.matmul %106, %108, %cst_50 {dimension_numbers = #tpu.dot_dimension_numbers<[1], [0], [0], [1], [0, 0, 1, 1], [], []>} : vector<16x32xbf16>, vector<32x32xbf16>, vector<16x32xf32> -> vector<16x32xf32>
    %c3_51 = arith.constant 3 : index
    %c0_52 = arith.constant 0 : index
    %c0_53 = arith.constant 0 : index
    %110 = vector.load %arg6[%c3_51, %c0_52, %c0_53] : memref<4x1x32xf32, #tpu.memory_space<vmem>>, vector<1x1x32xf32>
    %111 = vector.shape_cast %110 : vector<1x1x32xf32> to vector<1x32xf32>
    %112 = vector.broadcast %111 : vector<1x32xf32> to vector<16x32xf32>
    %113 = arith.addf %109, %112 : vector<16x32xf32>
    %114 = vector.shape_cast %113 : vector<16x32xf32> to vector<2x8x32xf32>
    %c0_54 = arith.constant 0 : index
    %c0_55 = arith.constant 0 : index
    %c0_56 = arith.constant 0 : index
    %115 = vector.load %arg7[%c0_54, %c0_55, %c0_56] : memref<2x8x32xf32, #tpu.memory_space<vmem>>, vector<2x8x32xf32>
    tpu.vector_store %arg7[%c0_54, %c0_55, %c0_56], %114 {strides = array<i32>} : memref<2x8x32xf32, #tpu.memory_space<vmem>>, vector<2x8x32xf32>,
    return
  }
  func.func @transform_0(%arg0: i32) -> (i32, i32, i32) {
    %c0_i32 = arith.constant 0 : i32
    %c0_i32_0 = arith.constant 0 : i32
    %c0_i32_1 = arith.constant 0 : i32
    return %arg0, %c0_i32, %c0_i32_0 : i32, i32, i32
  }
  func.func @transform_1(%arg0: i32) -> (i32, i32, i32) {
    %c0_i32 = arith.constant 0 : i32
    %c0_i32_0 = arith.constant 0 : i32
    %c0_i32_1 = arith.constant 0 : i32
    return %arg0, %c0_i32, %c0_i32_0 : i32, i32, i32
  }
  func.func @transform_2(%arg0: i32) -> (i32, i32, i32) {
    %c0_i32 = arith.constant 0 : i32
    %c0_i32_0 = arith.constant 0 : i32
    %c0_i32_1 = arith.constant 0 : i32
    return %arg0, %c0_i32, %c0_i32_0 : i32, i32, i32
  }
  func.func @transform_3(%arg0: i32) -> (i32, i32, i32) {
    %c0_i32 = arith.constant 0 : i32
    %c0_i32_0 = arith.constant 0 : i32
    %c0_i32_1 = arith.constant 0 : i32
    return %arg0, %c0_i32, %c0_i32_0 : i32, i32, i32
  }
  func.func @transform_4(%arg0: i32) -> (i32, i32, i32) {
    %c0_i32 = arith.constant 0 : i32
    %c0_i32_0 = arith.constant 0 : i32
    %c0_i32_1 = arith.constant 0 : i32
    %c0_i32_2 = arith.constant 0 : i32
    return %c0_i32, %c0_i32_0, %c0_i32_1 : i32, i32, i32
  }
  func.func @transform_5(%arg0: i32) -> (i32, i32, i32) {
    %c0_i32 = arith.constant 0 : i32
    %c0_i32_0 = arith.constant 0 : i32
    %c0_i32_1 = arith.constant 0 : i32
    %c0_i32_2 = arith.constant 0 : i32
    return %c0_i32, %c0_i32_0, %c0_i32_1 : i32, i32, i32
  }
  func.func @transform_6(%arg0: i32) -> (i32, i32, i32) {
    %c0_i32 = arith.constant 0 : i32
    %c0_i32_0 = arith.constant 0 : i32
    %c0_i32_1 = arith.constant 0 : i32
    return %arg0, %c0_i32, %c0_i32_0 : i32, i32, i32
  }
  func.func @transform_7(%arg0: i32) -> (i32, i32, i32, i32) {
    %c0_i32 = arith.constant 0 : i32
    %c0_i32_0 = arith.constant 0 : i32
    %c0_i32_1 = arith.constant 0 : i32
    %c0_i32_2 = arith.constant 0 : i32
    return %arg0, %c0_i32, %c0_i32_0, %c0_i32_1 : i32, i32, i32, i32
  }
}

</mosaic_0001>

<bundles_post_ra>
// kernel: tpu_custom_call.1
= control target key start
LH: loop header
LB: loop body
LE: loop exit
PB: predicated region body
PF: predicated region fallthrough
CT: control target
= control target key end

     0   :  { %13 = vsyncpa [#allocation3], 0  ;;  %s3490_s0 = inlined_call_operand.hbm [shape: f32[2,8,32], index: 0, kind: input, shape index: {}]   ;;  %s3491_s1 = inlined_call_operand.hbm [shape: f32[2,8,32], index: 1, kind: input, shape index: {}]   ;;  %s3492_s2 = inlined_call_operand.hbm [shape: f32[2,8,32], index: 2, kind: input, shape index: {}]   ;;  %s3493_s3 = inlined_call_operand.hbm [shape: f32[2,8,8], index: 3, kind: input, shape index: {}]   ;;  %s3494_s4 = inlined_call_operand.hbm [shape: bf16[4,32,32], index: 4, kind: input, shape index: {}]   ;;  %s3495_s5 = inlined_call_operand.vmem [shape: f32[4,1,32], index: 5, kind: input, shape index: {}]   ;;  %s3496_s6 = inlined_call_operand.hbm [shape: f32[2,8,32], index: 6, kind: output, shape index: {0}]   ;;  %s3497_s7 = inlined_call_operand.hbm [shape: bf16[2,4,8,8], index: 7, kind: output, shape index: {1}]  }
   0x1   :  { %14 = vsyncpa [#allocation6], 0 }
   0x2   :  { %15 = vsyncpa [#allocation9], 0 }
   0x3   :  { %16 = vsyncpa [#allocation4], 0 }
   0x4   :  { %17 = vsyncpa [#allocation13], 0  ;;  %s2931_s24 = smov [#allocation5]   ;;  %s2932_s26 = smov [#allocation8]  }
   0x5   :  { %s35_s25 = sshll.u32 %s2931_s24, 4  ;;  %s59_s27 = sshll.u32 %s2932_s26, 4  ;;  %s36_s25 = int_to_ptr.vmem [resolvable:$true] %s35_s25  ;;  %s2991_s27 = int_to_ptr.vmem [resolvable:$true] %s59_s27 }
   0x6   :  { %s2767_s30 = scalar_lea.hbm %s3491_s1, 256 }
   0x7   :  { %p2768_p0 = scmp.ne.s32.totalorder %s3491_s1, %s2767_s30  ;;  %p2771_p1 = scmp.lt.u32.totalorder %s2767_s30, %s3491_s1 }
   0x9   :  { %p2773_p2 = pnand %p2771_p1, %p2768_p0 }
   0xb   :  { %2776 = shalt.err (!%p2773_p2)
}
   0xc   :  { %s2777_s12 = scalar_lea.vmem %s36_s25, 256  ;;  %p2782_p4 = scmp.lt.s32.totalorder %s36_s25, %s36_s25 }
   0xd   :  { %p2778_p3 = scmp.ne.s32.totalorder %s36_s25, %s2777_s12  ;;  %p2783_p5 = scmp.lt.s32.totalorder %s2777_s12, %s2777_s12 }
   0xf   :  { %p2784_p6 = por %p2783_p5, %p2782_p4 }
  0x11   :  { %p2785_p7 = pnand %p2784_p6, %p2778_p3 }
  0x13   :  { %2788 = shalt.err (!%p2785_p7)
}
  0x14   :  { %s2933_s13 = smov 128   ;;  %s2934_s14 = smov 8  }
  0x15   :  { %41 = dma.hbm_to_vmem [thread:$0]  %s3491_s1, 256, %s36_s25, [#allocation6], %s2933_s13, %s2933_s13, %s2934_s14  }
  0x16   :  { %s2789_s19 = scalar_lea.hbm %s3493_s3, 256 }
  0x17   :  { %p2790_p8 = scmp.ne.s32.totalorder %s3493_s3, %s2789_s19  ;;  %p2793_p9 = scmp.lt.u32.totalorder %s2789_s19, %s3493_s3 }
  0x19   :  { %p2795_p10 = pnand %p2793_p9, %p2790_p8 }
  0x1b   :  { %2798 = shalt.err (!%p2795_p10)
}
  0x1c   :  { %s2799_s24 = scalar_lea.vmem %s2991_s27, 256  ;;  %p2804_p12 = scmp.lt.s32.totalorder %s2991_s27, %s2991_s27 }
  0x1d   :  { %p2800_p11 = scmp.ne.s32.totalorder %s2991_s27, %s2799_s24  ;;  %p2805_p13 = scmp.lt.s32.totalorder %s2799_s24, %s2799_s24 }
  0x1f   :  { %p2806_p0 = por %p2805_p13, %p2804_p12 }
  0x21   :  { %p2807_p1 = pnand %p2806_p0, %p2800_p11 }
  0x23   :  { %2810 = shalt.err (!%p2807_p1)
}
  0x24   :  { %65 = dma.hbm_to_vmem [thread:$0]  %s3493_s3, 256, %s2991_s27, [#allocation9], %s2933_s13, %s2933_s13, %s2934_s14  }
  0x25   :  { %s2935_s26 = smov [#allocation2]   ;;  %s2936_s29 = smov [#allocation7]  }
  0x26   :  { %s23_s28 = sshll.u32 %s2935_s26, 4  ;;  %s47_s30 = sshll.u32 %s2936_s29, 4  ;;  %s24_s28 = int_to_ptr.vmem [resolvable:$true] %s23_s28  ;;  %s3028_s30 = int_to_ptr.vmem [resolvable:$true] %s47_s30 }
  0x27   :  { %s2811_s10 = scalar_lea.hbm %s3490_s0, 256 }
  0x28   :  { %p2812_p2 = scmp.ne.s32.totalorder %s3490_s0, %s2811_s10  ;;  %p2815_p3 = scmp.lt.u32.totalorder %s2811_s10, %s3490_s0 }
  0x2a   :  { %p2817_p4 = pnand %p2815_p3, %p2812_p2 }
  0x2c   :  { %2820 = shalt.err (!%p2817_p4)
}
  0x2d   :  { %s2821_s3 = scalar_lea.vmem %s24_s28, 256  ;;  %p2826_p6 = scmp.lt.s32.totalorder %s24_s28, %s24_s28 }
  0x2e   :  { %p2822_p5 = scmp.ne.s32.totalorder %s24_s28, %s2821_s3  ;;  %p2827_p7 = scmp.lt.s32.totalorder %s2821_s3, %s2821_s3 }
  0x30   :  { %p2828_p8 = por %p2827_p7, %p2826_p6 }
  0x32   :  { %p2829_p9 = pnand %p2828_p8, %p2822_p5 }
  0x34   :  { %2832 = shalt.err (!%p2829_p9)
}
  0x35   :  { %29 = dma.hbm_to_vmem [thread:$0]  %s3490_s0, 256, %s24_s28, [#allocation3], %s2933_s13, %s2933_s13, %s2934_s14  }
  0x36   :  { %s2833_s20 = scalar_lea.hbm %s3492_s2, 256 }
  0x37   :  { %p2834_p10 = scmp.ne.s32.totalorder %s3492_s2, %s2833_s20  ;;  %p2837_p11 = scmp.lt.u32.totalorder %s2833_s20, %s3492_s2 }
  0x39   :  { %p2839_p12 = pnand %p2837_p11, %p2834_p10 }
  0x3b   :  { %2842 = shalt.err (!%p2839_p12)
}
  0x3c   :  { %s2843_s1 = scalar_lea.vmem %s3028_s30, 256  ;;  %p2848_p0 = scmp.lt.s32.totalorder %s3028_s30, %s3028_s30 }
  0x3d   :  { %p2844_p13 = scmp.ne.s32.totalorder %s3028_s30, %s2843_s1  ;;  %p2849_p1 = scmp.lt.s32.totalorder %s2843_s1, %s2843_s1 }
  0x3f   :  { %p2850_p2 = por %p2849_p1, %p2848_p0 }
  0x41   :  { %p2851_p3 = pnand %p2850_p2, %p2844_p13 }
  0x43   :  { %2854 = shalt.err (!%p2851_p3)
}
  0x44   :  { %53 = dma.hbm_to_vmem [thread:$0]  %s3492_s2, 256, %s3028_s30, [#allocation6], %s2933_s13, %s2933_s13, %s2934_s14  }
  0x45   :  { %s2937_s26 = smov [#allocation10]   ;;  %s2855_s9 = scalar_lea.hbm %s3494_s4, 1024 }
  0x46   :  { %s71_s28 = sshll.u32 %s2937_s26, 4  ;;  %p2856_p4 = scmp.ne.s32.totalorder %s3494_s4, %s2855_s9  ;;  %s72_s28 = int_to_ptr.vmem [resolvable:$true] %s71_s28 }
  0x47   :  { %p2859_p5 = scmp.lt.u32.totalorder %s2855_s9, %s3494_s4 }
  0x49   :  { %p2861_p6 = pnand %p2859_p5, %p2856_p4 }
  0x4b   :  { %2864 = shalt.err (!%p2861_p6)
}
  0x4c   :  { %s2865_s16 = scalar_lea.vmem %s72_s28, 1024  ;;  %p2870_p8 = scmp.lt.s32.totalorder %s72_s28, %s72_s28 }
  0x4d   :  { %p2866_p7 = scmp.ne.s32.totalorder %s72_s28, %s2865_s16  ;;  %p2871_p9 = scmp.lt.s32.totalorder %s2865_s16, %s2865_s16 }
  0x4f   :  { %p2872_p10 = por %p2871_p9, %p2870_p8 }
  0x51   :  { %p2873_p11 = pnand %p2872_p10, %p2866_p7 }
  0x53   :  { %2876 = shalt.err (!%p2873_p11)
}
  0x54   :  { %s2938_s2 = smov 64   ;;  %s2939_s30 = smov 4  }
  0x55   :  { %77 = dma.hbm_to_vmem [thread:$0]  %s3494_s4, 1024, %s72_s28, [#allocation9], %s2938_s2, %s2938_s2, %s2939_s30  }
  0x56   :  { %2921 = dma.done.wait [#allocation3], 256  }
  0x57   :  { %2922 = vsyncadd [#allocation3], 4294967040 }
  0x58   :  { %2923 = dma.done.wait [#allocation6], 512  }
  0x59   :  { %2924 = vsyncadd [#allocation6], 4294966784 }
  0x5a   :  { %2925 = dma.done.wait [#allocation9], 1280  }
  0x5b   :  { %2926 = vsyncadd [#allocation9], 4294966016  ;;  %v2940_v0 = vmov 0.0   ;;  %vm2941_vm0 = vmmov 0   ;;  %v2727_v1 = vld [vmem:[#allocation10 + $0x10] sm:$0xff]   ;;  %v2728_v2 = vld [vmem:[#allocation10] sm:$0xff]   ;;  %v336_v32 = vlaneseq }
  0x5c   :  { %2572 = vmatprep.subr.bf16.mxu1 %v2940_v0  ;;  %2564 = vmatprep.subr.bf16.mxu0 %v2940_v0  ;;  %v2729_v3 = vld [vmem:[#allocation10 + $0x18] sm:$0xff]   ;;  %v99_v4 = vld [vmem:[#allocation5] sm:$0xff]  ;;  %v2730_v6 = vld [vmem:[#allocation10 + $0x8] sm:$0xff]   ;;  %vm128_vm1 = vcmask 261120   ;;  %s2942_s20 = smov 104   ;;  %s2943_s21 = smov 120  }
  0x5d   :  { %2576 = vmatprep.mubr.msk.bf16.mxu1 %vm2941_vm0, %v2940_v0  ;;  %2568 = vmatprep.mubr.msk.bf16.mxu0 %vm2941_vm0, %v2940_v0  ;;  %v100_v5 = vld [vmem:[#allocation5 + $0x8] sm:$0xff]  ;;  %v96_v7 = vld [vmem:[#allocation2] sm:$0xff]  ;;  %v97_v9 = vld [vmem:[#allocation2 + $0x8] sm:$0xff]  ;;  %s2944_s22 = smov 112   ;;  %v2945_v30 = vmov 1983009808  }
  0x5e   :  { %2573 = vmatpush3.bf16.msra.mxu1 %v2727_v1  ;;  %2565 = vmatpush3.bf16.msra.mxu0 %v2728_v2  ;;  %v101_v8 = vpack.c.bf16 %v100_v5, %v99_v4  ;;  %v98_v10 = vpack.c.bf16 %v97_v9, %v96_v7  ;;  %v2474_v11 = vld [vmem:[%s3495_s5 + $0x1] ss:$0 sm:$0xff]  ;;  %v2469_v13 = vld [vmem:[%s3495_s5] ss:$0 sm:$0xff]  ;;  %v2732_v26 = vld [vmem:[#allocation10 + $0x28] sm:$0xff]   ;;  %v334_v31 = vunpack.c.l.s4 %v2945_v30  ;;  %v337_v36 = vshrl.u32 %v336_v32, 7 }
  0x5f   :  { %2574 = vmatprep.subr.bf16.mxu1 %v2940_v0  ;;  %2566 = vmatprep.subr.bf16.mxu0 %v2940_v0  ;;  %v2731_v17 = vld [vmem:[#allocation10 + $0x20] sm:$0xff]   ;;  %v103_v28 = vld [vmem:[#allocation7 + $0x8] sm:$0xff]  ;;  %v2946_v33 = vmov 1934713408   ;;  %vm996_vm2 = vcmask 64512   ;;  %vm1237_vm3 = vcmask 1043456  }
  0x60   :  { %v102_v27 = vld [vmem:[#allocation7] sm:$0xff]  ;;  %v366_v34 = vunpack.c.l.s4 %v2946_v33  ;;  %v335_v35 = vunpack.c.0.s8 %v334_v31  ;;  %vm1229_vm4 = vcmask 60416   ;;  %s2947_s1 = smov 16   ;;  %s2948_s0 = smov 24   ;;  %vm1568_vm5 = vcmask 130048  }
  0x61   :  { %v104_v29 = vpack.c.bf16 %v103_v28, %v102_v27  ;;  %vm1570_vm6 = vcmask 195584   ;;  %s2949_s25 = smov [#allocation12]  }
  0x62   :  { %2575 = vmatpush3.bf16.msra.mxu1 %v2729_v3  ;;  %2567 = vmatpush3.bf16.msra.mxu0 %v2730_v6  ;;  %v367_v39 = vunpack.c.0.s8 %v366_v34  ;;  %v3117_v40 = vsub.s32 %v335_v35, %v337_v36  ;;  %s2451_s26 = sshll.u32 %s2949_s25, 4  ;;  %s2452_s26 = int_to_ptr.vmem [resolvable:$true] %s2451_s26 }
  0x63   :  { %2588 = vmatprep.subr.bf16.mxu1 %v2940_v0  ;;  %2580 = vmatprep.subr.bf16.mxu0 %v2940_v0  ;;  %s2877_s28 = scalar_lea.vmem %s2452_s26, 512  ;;  %p2882_p13 = scmp.lt.s32.totalorder %s2452_s26, %s2452_s26 }
  0x64   :  { %v3119_v47 = vsub.s32 %v367_v39, %v337_v36  ;;  %p2878_p12 = scmp.ne.s32.totalorder %s2452_s26, %s2877_s28  ;;  %p2883_p0 = scmp.lt.s32.totalorder %s2877_s28, %s2877_s28 }
  0x65   :  { %2577 = vmatmul.mubr.msk.bf16.vlgmr.msra.gmra.mrb[0].mxu1 %vm128_vm1, %v101_v8  ;;  %2569 = vmatmul.mubr.msk.bf16.vlgmr.msra.gmra.mrb[0].mxu0 %vm128_vm1, %v98_v10 }
  0x66   :  { %2590 = vmatprep.mubr.msk.bf16.mxu1 %vm2941_vm0, %v2940_v0  ;;  %2584 = vmatprep.mubr.msk.bf16.mxu0 %vm2941_vm0, %v2940_v0  ;;  %p2884_p1 = por %p2883_p0, %p2882_p13 }
  0x67   :  { %2581 = vmatpush3.bf16.msra.mxu0 %v2731_v17 }
  0x68   :  { %2582 = vmatprep.subr.bf16.mxu0 %v2940_v0  ;;  %p2885_p2 = pnand %p2884_p1, %p2878_p12 }
  0x6b   :  { %2583 = vmatpush3.bf16.msra.mxu0 %v2732_v26 }
  0x6c   :  { %2594 = vmatprep.subr.bf16.mxu0 %v2940_v0 }
  0x6e   :  { %2585 = vmatmul.mubr.msk.bf16.vlgmr.msra.gmra.mrb[4].mxu0 %vm128_vm1, %v104_v29 }
  0x6f   :  { %2596 = vmatprep.mubr.msk.bf16.mxu0 %vm2941_vm0, %v2940_v0 }
 0x138   :  { %v235_v12 = vpop.f32.mrb[0].mxu1  ;;  %v166_v16 = vpop.f32.mrb[0].mxu0 }
 0x139   :  { %v236_v14 = vadd.f32 %v2474_v11, %v235_v12  ;;  %v2578_v15 = vpop.f32.mrb[1].mxu1  ;;  %v2570_v19 = vpop.f32.mrb[1].mxu0  ;;  %v167_v22 = vadd.f32 %v2469_v13, %v166_v16 }
 0x13a   :  { %v238_v18 = vpop.f32.mrb[2].mxu1  ;;  %v169_v23 = vpop.f32.mrb[2].mxu0 }
 0x13b   :  { %v3102_v20 = vadd.f32 %v2474_v11, %v238_v18  ;;  %481 = vrot.lane.b32.xlu1 %v236_v14, %s2942_s20  ;;  %469 = vrot.lane.b32.xlu0 %v236_v14, %s2943_s21  ;;  %v2579_v21 = vpop.f32.mrb[3].mxu1  ;;  %v3106_v24 = vadd.f32 %v2469_v13, %v169_v23  ;;  %v2571_v25 = vpop.f32.mrb[3].mxu0 }
 0x13f   :  { %475 = vrot.lane.b32.xlu0 %v236_v14, %s2944_s22  ;;  %313 = vrot.lane.b32.xlu1 %v167_v22, %s2943_s21 }
 0x143   :  { %319 = vrot.lane.b32.xlu0 %v167_v22, %s2944_s22  ;;  %325 = vrot.lane.b32.xlu1 %v167_v22, %s2942_s20 }
 0x1ad   :  { %v482_v37 = vpop.permute.xlu1 %481  ;;  %v470_v38 = vpop.permute.xlu0 %469 }
 0x1ae   :  { %v503_v41 = vcombine.low %v470_v38, %v482_v37  ;;  %v504_v42 = vcombine.high %v470_v38, %v482_v37 }
 0x1b0   :  { %v511_v48 = vrot.slane %v503_v41, %v3117_v40  ;;  %v518_v49 = vrot.slane %v504_v42, %v3117_v40 }
 0x1b1   :  { %v476_v43 = vpop.permute.xlu0 %475  ;;  %v314_v44 = vpop.permute.xlu1 %313 }
 0x1b2   :  { %v487_v45 = vcombine.low %v236_v14, %v476_v43  ;;  %v488_v46 = vcombine.high %v236_v14, %v476_v43 }
 0x1b4   :  { %v495_v50 = vrot.slane %v487_v45, %v3117_v40  ;;  %v502_v51 = vrot.slane %v488_v46, %v3117_v40 }
 0x1b5   :  { %v320_v52 = vpop.permute.xlu0 %319  ;;  %v326_v53 = vpop.permute.xlu1 %325 }
 0x1b6   :  { %v519_v54 = vcombine.low %v495_v50, %v511_v48  ;;  %v520_v55 = vcombine.high %v495_v50, %v511_v48  ;;  %v535_v56 = vcombine.low %v502_v51, %v518_v49  ;;  %v536_v57 = vcombine.high %v502_v51, %v518_v49 }
 0x1b7   :  { %v331_v58 = vcombine.low %v167_v22, %v320_v52  ;;  %v332_v59 = vcombine.high %v167_v22, %v320_v52  ;;  %v347_v60 = vcombine.low %v314_v44, %v326_v53  ;;  %v348_v61 = vcombine.high %v314_v44, %v326_v53 }
 0x1b8   :  { %v527_v62 = vrot.slane %v519_v54, %v3119_v47  ;;  %v534_v63 = vrot.slane %v520_v55, %v3119_v47  ;;  %v543_v1 = vrot.slane %v535_v56, %v3119_v47  ;;  %v550_v2 = vrot.slane %v536_v57, %v3119_v47 }
 0x1b9   :  { %v339_v3 = vrot.slane %v331_v58, %v3117_v40  ;;  %v346_v4 = vrot.slane %v332_v59, %v3117_v40  ;;  %v355_v5 = vrot.slane %v347_v60, %v3117_v40  ;;  %v362_v6 = vrot.slane %v348_v61, %v3117_v40 }
 0x1ba   :  { %v851_v7 = vcombine.low %v527_v62, %v534_v63  ;;  %v2485_v8 = vcombine.high %v527_v62, %v534_v63  ;;  %v867_v9 = vcombine.low %v543_v1, %v550_v2  ;;  %v2486_v10 = vcombine.high %v543_v1, %v550_v2 }
 0x1bb   :  { %v363_v11 = vcombine.low %v339_v3, %v355_v5  ;;  %v364_v12 = vcombine.high %v339_v3, %v355_v5  ;;  %v379_v13 = vcombine.low %v346_v4, %v362_v6  ;;  %v380_v14 = vcombine.high %v346_v4, %v362_v6 }
 0x1bc   :  { %v858_v15 = vrot.slane %v851_v7, %v3117_v40  ;;  %v866_v16 = vrot.slane %v2485_v8, %v3117_v40  ;;  %v874_v17 = vrot.slane %v867_v9, %v3117_v40  ;;  %v882_v18 = vrot.slane %v2486_v10, %v3117_v40  ;;  %v2479_v8 = vld [vmem:[%s3495_s5 + $0x2] ss:$0 sm:$0xff]  ;;  %v304_v9 = vpop.f32.mrb[4].mxu0 }
 0x1bd   :  { %v371_v19 = vrot.slane %v363_v11, %v3119_v47  ;;  %v378_v21 = vrot.slane %v364_v12, %v3119_v47  ;;  %v387_v22 = vrot.slane %v379_v13, %v3119_v47  ;;  %v394_v23 = vrot.slane %v380_v14, %v3119_v47  ;;  %v2586_v10 = vpop.f32.mrb[5].mxu0  ;;  %v995_v14 = vld [vmem:[#allocation8] sm:$0xff] }
 0x1be   :  { %v883_v25 = vcombine.low %v858_v15, %v866_v16  ;;  %v899_v26 = vcombine.low %v874_v17, %v882_v18  ;;  %v884_v27 = vcombine.high %v858_v15, %v866_v16  ;;  %v900_v28 = vcombine.high %v874_v17, %v882_v18  ;;  %v307_v11 = vpop.f32.mrb[6].mxu0 }
 0x1bf   :  { %v779_v29 = vcombine.low %v371_v19, %v378_v21  ;;  %v2483_v30 = vcombine.high %v371_v19, %v378_v21  ;;  %v795_v31 = vcombine.low %v387_v22, %v394_v23  ;;  %v2484_v32 = vcombine.high %v387_v22, %v394_v23  ;;  %v2587_v13 = vpop.f32.mrb[7].mxu0 }
 0x1c0   :  { %v891_v33 = vrot.slane %v883_v25, %v3119_v47  ;;  %v907_v34 = vrot.slane %v899_v26, %v3119_v47  ;;  %v898_v42 = vrot.slane %v884_v27, %v3119_v47  ;;  %v914_v43 = vrot.slane %v900_v28, %v3119_v47 }
 0x1c1   :  { %v786_v35 = vrot.slane %v779_v29, %v3117_v40  ;;  %v794_v36 = vrot.slane %v2483_v30, %v3117_v40  ;;  %v802_v37 = vrot.slane %v795_v31, %v3117_v40  ;;  %v810_v38 = vrot.slane %v2484_v32, %v3117_v40 }
 0x1c2   :  { %v915_v39 = vcombine.low %v891_v33, %v907_v34  ;;  %v916_v41 = vcombine.high %v891_v33, %v907_v34  ;;  %v917_v53 = vcombine.low %v898_v42, %v914_v43  ;;  %v918_v54 = vcombine.high %v898_v42, %v914_v43 }
 0x1c3   :  { %v811_v44 = vcombine.low %v786_v35, %v794_v36  ;;  %v827_v45 = vcombine.low %v802_v37, %v810_v38  ;;  %v812_v55 = vcombine.high %v786_v35, %v794_v36  ;;  %v828_v56 = vcombine.high %v802_v37, %v810_v38 }
 0x1c4   :  { %v919_v46 = vpack.c.bf16 %v915_v39, %v915_v39  ;;  %v920_v48 = vpack.c.bf16 %v916_v41, %v916_v41  ;;  %v921_v59 = vpack.c.bf16 %v917_v53, %v917_v53  ;;  %v922_v60 = vpack.c.bf16 %v918_v54, %v918_v54 }
 0x1c5   :  { %v819_v49 = vrot.slane %v811_v44, %v3119_v47  ;;  %v835_v50 = vrot.slane %v827_v45, %v3119_v47  ;;  %v826_v63 = vrot.slane %v812_v55, %v3119_v47  ;;  %v842_v1 = vrot.slane %v828_v56, %v3119_v47 }
 0x1c6   :  { %v1001_v51 = vsel %vm996_vm2, %v919_v46, 0  ;;  %v1047_v52 = vsel %vm996_vm2, %v920_v48, 0  ;;  %v1093_v2 = vsel %vm996_vm2, %v921_v59, 0  ;;  %v1139_v3 = vsel %vm996_vm2, %v922_v60, 0 }
 0x1c7   :  { %2589 = vmatpush3.bf16.xpose.msra.mxu1 %v1001_v51  ;;  %2595 = vmatpush3.bf16.xpose.msra.mxu0 %v1047_v52  ;;  %v843_v57 = vcombine.low %v819_v49, %v835_v50  ;;  %v844_v58 = vcombine.high %v819_v49, %v835_v50  ;;  %v845_v4 = vcombine.low %v826_v63, %v842_v1 }
 0x1c8   :  { %2600 = vmatprep.subr.bf16.mxu1 %v2940_v0  ;;  %2606 = vmatprep.subr.bf16.mxu0 %v2940_v0  ;;  %v846_v5 = vcombine.high %v826_v63, %v842_v1  ;;  %v3176_v12 = vadd.f32 %v2479_v8, %v307_v11  ;;  %v305_v42 = vadd.f32 %v2479_v8, %v304_v9 }
 0x1c9   :  { %v847_v61 = vpack.c.bf16 %v843_v57, %v843_v57  ;;  %v848_v62 = vpack.c.bf16 %v844_v58, %v844_v58  ;;  %v849_v6 = vpack.c.bf16 %v845_v4, %v845_v4 }
 0x1ca   :  { %v850_v7 = vpack.c.bf16 %v846_v5, %v846_v5 }
 0x1ce   :  { %2591 = vmatmul.mubr.msk.bf16.vlgmr.msra.gmra.mrb[4].mxu1 %vm996_vm2, %v847_v61  ;;  %2597 = vmatmul.mubr.msk.bf16.vlgmr.msra.gmra.mrb[8].mxu0 %vm996_vm2, %v848_v62 }
 0x1cf   :  { %2601 = vmatpush3.bf16.xpose.msra.mxu1 %v1093_v2  ;;  %2607 = vmatpush3.bf16.xpose.msra.mxu0 %v1139_v3 }
 0x1d0   :  { %2602 = vmatprep.mubr.msk.bf16.mxu1 %vm2941_vm0, %v2940_v0  ;;  %2608 = vmatprep.mubr.msk.bf16.mxu0 %vm2941_vm0, %v2940_v0 }
 0x1d1   :  { %2612 = vmatprep.subr.bf16.mxu1 %v2940_v0  ;;  %2618 = vmatprep.subr.bf16.mxu0 %v2940_v0 }
 0x1d6   :  { %2603 = vmatmul.mubr.msk.bf16.vlgmr.msra.gmra.mrb[8].mxu1 %vm996_vm2, %v849_v6  ;;  %2609 = vmatmul.mubr.msk.bf16.vlgmr.msra.gmra.mrb[12].mxu0 %vm996_vm2, %v850_v7 }
 0x1d7   :  { %2614 = vmatprep.mubr.msk.bf16.mxu1 %vm2941_vm0, %v2940_v0  ;;  %2620 = vmatprep.mubr.msk.bf16.mxu0 %vm2941_vm0, %v2940_v0 }
 0x2a1   :  { %v1037_v15 = vpop.f32.mrb[4].mxu1  ;;  %v1083_v16 = vpop.f32.mrb[8].mxu0 }
 0x2a2   :  { %v1038_v17 = vadd.f32 %v1037_v15, %v995_v14  ;;  %v1084_v18 = vadd.f32 %v1083_v16, %v995_v14  ;;  %v2592_v19 = vpop.f32.mrb[5].mxu1  ;;  %v2598_v21 = vpop.f32.mrb[9].mxu0 }
 0x2a3   :  { %v1040_v22 = vpop.f32.mrb[6].mxu1  ;;  %v1086_v23 = vpop.f32.mrb[10].mxu0 }
 0x2a4   :  { %v2593_v25 = vpop.f32.mrb[7].mxu1  ;;  %v2599_v26 = vpop.f32.mrb[11].mxu0  ;;  %v1181_v27 = vsel %vm996_vm2, %v1038_v17, -inf  ;;  %v1184_v28 = vsel %vm996_vm2, %v1084_v18, -inf }
 0x2a5   :  { %1182 = vmax.xlane.f32.xlu0 %v1181_v27  ;;  %1185 = vmax.xlane.f32.xlu1 %v1184_v28 }
 0x2a9   :  { %v1129_v29 = vpop.f32.mrb[8].mxu1  ;;  %v1175_v30 = vpop.f32.mrb[12].mxu0 }
 0x2aa   :  { %v1130_v31 = vadd.f32 %v1129_v29, %v995_v14  ;;  %v2604_v32 = vpop.f32.mrb[9].mxu1  ;;  %v2610_v33 = vpop.f32.mrb[13].mxu0  ;;  %v1176_v36 = vadd.f32 %v1175_v30, %v995_v14 }
 0x2ab   :  { %v1132_v34 = vpop.f32.mrb[10].mxu1  ;;  %v1178_v35 = vpop.f32.mrb[14].mxu0 }
 0x2ac   :  { %v2605_v37 = vpop.f32.mrb[11].mxu1  ;;  %v2611_v38 = vpop.f32.mrb[15].mxu0  ;;  %v1187_v39 = vsel %vm996_vm2, %v1130_v31, -inf  ;;  %v1190_v41 = vsel %vm996_vm2, %v1176_v36, -inf }
 0x2ad   :  { %1188 = vmax.xlane.f32.xlu0 %v1187_v39 }
 0x2b1   :  { %1191 = vmax.xlane.f32.xlu0 %v1190_v41 }
 0x2b6   :  { %625 = vrot.lane.b32.xlu1 %v305_v42, %s2943_s21 }
 0x2ba   :  { %637 = vrot.lane.b32.xlu1 %v305_v42, %s2942_s20 }
 0x2be   :  { %477 = vrot.lane.b32.xlu1 %v3102_v20, %s2944_s22 }
 0x2c2   :  { %483 = vrot.lane.b32.xlu1 %v3102_v20, %s2942_s20 }
 0x2c7   :  { %631 = vrot.lane.b32.xlu0 %v305_v42, %s2944_s22 }
 0x2cb   :  { %471 = vrot.lane.b32.xlu0 %v3102_v20, %s2943_s21 }
 0x2cf   :  { %315 = vrot.lane.b32.xlu0 %v3106_v24, %s2943_s21 }
 0x332   :  { %v1183_v43 = vpop.xlane.xlu0 %1182  ;;  %v1186_v44 = vpop.xlane.xlu1 %1185 }
 0x333   :  { %v1193_v45 = vsub.f32 %v1038_v17, %v1183_v43  ;;  %v1194_v46 = vsub.f32 %v1084_v18, %v1186_v44 }
 0x335   :  { %v1197_v48 = vmul.f32 1.442695, %v1193_v45  ;;  %v1199_v49 = vmul.f32 1.442695, %v1194_v46 }
 0x336   :  { %v626_v50 = vpop.permute.xlu1 %625 }
 0x337   :  { %2735 = vpow2.f32 %v1197_v48 }
 0x338   :  { %2737 = vpow2.f32 %v1199_v49 }
 0x33a   :  { %v1189_v51 = vpop.xlane.xlu0 %1188  ;;  %v638_v54 = vpop.permute.xlu1 %637 }
 0x33b   :  { %v1195_v52 = vsub.f32 %v1130_v31, %v1189_v51  ;;  %v659_v58 = vcombine.low %v626_v50, %v638_v54  ;;  %v660_v59 = vcombine.high %v626_v50, %v638_v54 }
 0x33d   :  { %v1201_v53 = vmul.f32 1.442695, %v1195_v52  ;;  %v667_v4 = vrot.slane %v659_v58, %v3117_v40  ;;  %v674_v5 = vrot.slane %v660_v59, %v3117_v40 }
 0x33e   :  { %v1192_v55 = vpop.xlane.xlu0 %1191  ;;  %v478_v49 = vpop.permute.xlu1 %477 }
 0x33f   :  { %2739 = vpow2.f32 %v1201_v53  ;;  %v1196_v56 = vsub.f32 %v1176_v36, %v1192_v55  ;;  %v555_v54 = vcombine.low %v3102_v20, %v478_v49  ;;  %v556_v55 = vcombine.high %v3102_v20, %v478_v49 }
 0x341   :  { %v3193_v57 = vpop.eup %2735  ;;  %v1203_v60 = vmul.f32 1.442695, %v1196_v56  ;;  %v563_v59 = vrot.slane %v555_v54, %v3117_v40 }
 0x342   :  { %v3195_v61 = vpop.eup %2737  ;;  %v632_v62 = vpop.permute.xlu0 %631  ;;  %v1205_v63 = vsel %vm996_vm2, %v3193_v57, 0.0 }
 0x343   :  { %2741 = vpow2.f32 %v1203_v60  ;;  %v643_v1 = vcombine.low %v305_v42, %v632_v62  ;;  %v644_v2 = vcombine.high %v305_v42, %v632_v62  ;;  %1206 = vadd.xlane.f32.xlu1 %v1205_v63  ;;  %v1208_v3 = vsel %vm996_vm2, %v3195_v61, 0.0  ;;  %v484_v51 = vpop.permute.xlu1 %483 }
 0x344   :  { %1209 = vadd.xlane.f32.xlu0 %v1208_v3  ;;  %v570_v60 = vrot.slane %v556_v55, %v3117_v40 }
 0x345   :  { %v651_v6 = vrot.slane %v643_v1, %v3117_v40  ;;  %v658_v7 = vrot.slane %v644_v2, %v3117_v40 }
 0x346   :  { %v472_v50 = vpop.permute.xlu0 %471 }
 0x347   :  { %v675_v8 = vcombine.low %v651_v6, %v667_v4  ;;  %v676_v9 = vcombine.high %v651_v6, %v667_v4  ;;  %v691_v10 = vcombine.low %v658_v7, %v674_v5  ;;  %v692_v11 = vcombine.high %v658_v7, %v674_v5 }
 0x348   :  { %v571_v52 = vcombine.low %v472_v50, %v484_v51  ;;  %v572_v53 = vcombine.high %v472_v50, %v484_v51 }
 0x349   :  { %v3205_v13 = vpop.eup %2739  ;;  %v683_v14 = vrot.slane %v675_v8, %v3119_v47  ;;  %v690_v15 = vrot.slane %v676_v9, %v3119_v47  ;;  %v699_v16 = vrot.slane %v691_v10, %v3119_v47  ;;  %v706_v17 = vrot.slane %v692_v11, %v3119_v47 }
 0x34a   :  { %v1211_v18 = vsel %vm996_vm2, %v3205_v13, 0.0  ;;  %v579_v56 = vrot.slane %v571_v52, %v3117_v40  ;;  %v586_v58 = vrot.slane %v572_v53, %v3117_v40  ;;  %v316_v6 = vpop.permute.xlu0 %315 }
 0x34b   :  { %v923_v19 = vcombine.low %v683_v14, %v690_v15  ;;  %v2487_v21 = vcombine.high %v683_v14, %v690_v15  ;;  %v939_v22 = vcombine.low %v699_v16, %v706_v17  ;;  %v2488_v23 = vcombine.high %v699_v16, %v706_v17  ;;  %1212 = vadd.xlane.f32.xlu1 %v1211_v18 }
 0x34c   :  { %v587_v62 = vcombine.low %v563_v59, %v579_v56  ;;  %v588_v63 = vcombine.high %v563_v59, %v579_v56  ;;  %v603_v1 = vcombine.low %v570_v60, %v586_v58  ;;  %v604_v2 = vcombine.high %v570_v60, %v586_v58 }
 0x34d   :  { %v3213_v25 = vpop.eup %2741  ;;  %v930_v26 = vrot.slane %v923_v19, %v3117_v40  ;;  %v938_v27 = vrot.slane %v2487_v21, %v3117_v40  ;;  %v946_v28 = vrot.slane %v939_v22, %v3117_v40  ;;  %v954_v29 = vrot.slane %v2488_v23, %v3117_v40 }
 0x34e   :  { %v1214_v30 = vsel %vm996_vm2, %v3213_v25, 0.0  ;;  %v595_v3 = vrot.slane %v587_v62, %v3119_v47  ;;  %v602_v4 = vrot.slane %v588_v63, %v3119_v47  ;;  %v611_v5 = vrot.slane %v603_v1, %v3119_v47 }
 0x34f   :  { %v955_v31 = vcombine.low %v930_v26, %v938_v27  ;;  %v971_v32 = vcombine.low %v946_v28, %v954_v29  ;;  %v956_v33 = vcombine.high %v930_v26, %v938_v27  ;;  %1215 = vadd.xlane.f32.xlu0 %v1214_v30  ;;  %v972_v37 = vcombine.high %v946_v28, %v954_v29 }
 0x350   :  { %v618_v20 = vrot.slane %v604_v2, %v3119_v47  ;;  %v1644_v7 = vcombine.low %v595_v3, %v602_v4  ;;  %v2501_v8 = vcombine.high %v595_v3, %v602_v4 }
 0x351   :  { %v963_v34 = vrot.slane %v955_v31, %v3119_v47  ;;  %v979_v35 = vrot.slane %v971_v32, %v3119_v47  ;;  %v970_v36 = vrot.slane %v956_v33, %v3119_v47  ;;  %v986_v41 = vrot.slane %v972_v37, %v3119_v47 }
 0x352   :  { %v1660_v10 = vcombine.low %v611_v5, %v618_v20  ;;  %v2502_v11 = vcombine.high %v611_v5, %v618_v20  ;;  %v1651_v15 = vrot.slane %v1644_v7, %v3117_v40  ;;  %v1659_v16 = vrot.slane %v2501_v8, %v3117_v40 }
 0x353   :  { %v987_v38 = vcombine.low %v963_v34, %v979_v35  ;;  %v988_v39 = vcombine.high %v963_v34, %v979_v35  ;;  %v3225_v44 = vcombine.low %v970_v36, %v986_v41  ;;  %v3227_v45 = vcombine.high %v970_v36, %v986_v41 }
 0x354   :  { %v3250_v17 = vrot.slane %v1660_v10, %v3117_v40  ;;  %v3253_v18 = vrot.slane %v2502_v11, %v3117_v40  ;;  %v1676_v21 = vcombine.low %v1651_v15, %v1659_v16 }
 0x355   :  { %v991_v42 = vpack.c.bf16 %v987_v38, %v987_v38  ;;  %v992_v43 = vpack.c.bf16 %v988_v39, %v988_v39  ;;  %v993_v29 = vpack.c.bf16 %v3225_v44, %v3225_v44  ;;  %v994_v33 = vpack.c.bf16 %v3227_v45, %v3227_v45 }
 0x356   :  { %v1692_v22 = vcombine.low %v3250_v17, %v3253_v18  ;;  %v1684_v30 = vrot.slane %v1676_v21, %v3119_v47  ;;  %v1677_v45 = vcombine.high %v1651_v15, %v1659_v16  ;;  %v1693_v53 = vcombine.high %v3250_v17, %v3253_v18 }
 0x357   :  { %v1239_v46 = vsel %vm1237_vm3, %v991_v42, 0  ;;  %v1285_v48 = vsel %vm1237_vm3, %v992_v43, 0  ;;  %v1377_v38 = vsel %vm1237_vm3, %v994_v33, 0 }
 0x358   :  { %2613 = vmatpush3.bf16.msra.mxu1 %v1239_v46  ;;  %2619 = vmatpush3.bf16.msra.mxu0 %v1285_v48  ;;  %v1700_v34 = vrot.slane %v1692_v22, %v3119_v47  ;;  %v1707_v20 = vrot.slane %v1693_v53, %v3119_v47 }
 0x359   :  { %2624 = vmatprep.subr.bf16.mxu1 %v2940_v0  ;;  %2630 = vmatprep.subr.bf16.mxu0 %v2940_v0 }
 0x35a   :  { %v1708_v41 = vcombine.low %v1684_v30, %v1700_v34  ;;  %v1709_v52 = vcombine.high %v1684_v30, %v1700_v34 }
 0x35c   :  { %321 = vrot.lane.b32.xlu1 %v3106_v24, %s2944_s22  ;;  %v1712_v51 = vpack.c.bf16 %v1708_v41, %v1708_v41  ;;  %v1713_v5 = vpack.c.bf16 %v1709_v52, %v1709_v52 }
 0x35e   :  { %v1794_v4 = vsel %vm996_vm2, %v1712_v51, 0  ;;  %v1840_v16 = vsel %vm996_vm2, %v1713_v5, 0 }
 0x365   :  { %327 = vrot.lane.b32.xlu0 %v3106_v24, %s2942_s20 }
 0x3d0   :  { %v1207_v9 = vpop.xlane.xlu1 %1206 }
 0x3d1   :  { %2743 = vrcp.f32 %v1207_v9  ;;  %v1210_v14 = vpop.xlane.xlu0 %1209 }
 0x3d2   :  { %2745 = vrcp.f32 %v1210_v14 }
 0x3d8   :  { %v1213_v19 = vpop.xlane.xlu1 %1212 }
 0x3d9   :  { %2747 = vrcp.f32 %v1213_v19 }
 0x3db   :  { %v2744_v23 = vpop.eup %2743 }
 0x3dc   :  { %v2746_v26 = vpop.eup %2745  ;;  %v1221_v27 = vmul.f32 %v2744_v23, %v3193_v57  ;;  %v322_v28 = vpop.permute.xlu1 %321 }
 0x3dd   :  { %v1222_v31 = vmul.f32 %v2746_v26, %v3195_v61  ;;  %v1216_v32 = vpop.xlane.xlu0 %1215  ;;  %v399_v36 = vcombine.low %v3106_v24, %v322_v28  ;;  %v400_v37 = vcombine.high %v3106_v24, %v322_v28  ;;  %v1331_v61 = vsel %vm1237_vm3, %v993_v29, 0 }
 0x3de   :  { %2749 = vrcp.f32 %v1216_v32  ;;  %v1225_v35 = vpack.c.bf16 %v1221_v27, %v1221_v27 }
 0x3df   :  { %v1226_v57 = vpack.c.bf16 %v1222_v31, %v1222_v31  ;;  %v407_v44 = vrot.slane %v399_v36, %v3117_v40  ;;  %v414_v48 = vrot.slane %v400_v37, %v3117_v40 }
 0x3e0   :  { %1230 = vst.msk [vmem:[#allocation12] sm:$0xf] %vm1229_vm4, %v1225_v35  ;;  %2615 = vmatmul.mubr.msk.bf16.vlgmr.msra.gmra.mrb[12].mxu1 %vm996_vm2, %v1225_v35 }
 0x3e1   :  { %1231 = vst.msk [vmem:[#allocation12 + $0x4] sm:$0xf] %vm1229_vm4, %v1226_v57  ;;  %2621 = vmatmul.mubr.msk.bf16.vlgmr.msra.gmra.mrb[16].mxu0 %vm996_vm2, %v1226_v57  ;;  %2625 = vmatpush3.bf16.msra.mxu1 %v1331_v61  ;;  %v328_v39 = vpop.permute.xlu0 %327 }
 0x3e2   :  { %2631 = vmatpush3.bf16.msra.mxu0 %v1377_v38  ;;  %v415_v42 = vcombine.low %v316_v6, %v328_v39  ;;  %v416_v43 = vcombine.high %v316_v6, %v328_v39  ;;  %2626 = vmatprep.mubr.msk.bf16.mxu1 %vm2941_vm0, %v2940_v0 }
 0x3e3   :  { %v2748_v24 = vpop.eup %2747  ;;  %2636 = vmatprep.subr.bf16.mxu1 %v2940_v0  ;;  %2632 = vmatprep.mubr.msk.bf16.mxu0 %vm2941_vm0, %v2940_v0 }
 0x3e4   :  { %v1223_v46 = vmul.f32 %v2748_v24, %v3205_v13  ;;  %v423_v49 = vrot.slane %v415_v42, %v3117_v40  ;;  %v430_v50 = vrot.slane %v416_v43, %v3117_v40  ;;  %2642 = vmatprep.subr.bf16.mxu0 %v2940_v0  ;;  %v1691_v13 = vrot.slane %v1677_v45, %v3119_v47 }
 0x3e6   :  { %v431_v54 = vcombine.low %v407_v44, %v423_v49  ;;  %v432_v55 = vcombine.high %v407_v44, %v423_v49  ;;  %v447_v56 = vcombine.low %v414_v48, %v430_v50  ;;  %v448_v58 = vcombine.high %v414_v48, %v430_v50 }
 0x3e7   :  { %v1227_v59 = vpack.c.bf16 %v1223_v46, %v1223_v46  ;;  %v1710_v19 = vcombine.low %v1691_v13, %v1707_v20  ;;  %v1711_v21 = vcombine.high %v1691_v13, %v1707_v20 }
 0x3e8   :  { %v2750_v60 = vpop.eup %2749  ;;  %v439_v62 = vrot.slane %v431_v54, %v3119_v47  ;;  %v446_v63 = vrot.slane %v432_v55, %v3119_v47  ;;  %v455_v1 = vrot.slane %v447_v56, %v3119_v47  ;;  %v462_v2 = vrot.slane %v448_v58, %v3119_v47 }
 0x3e9   :  { %v1224_v3 = vmul.f32 %v2750_v60, %v3213_v25  ;;  %1232 = vst.msk [vmem:[#allocation12 + $0x8] sm:$0xf] %vm1229_vm4, %v1227_v59  ;;  %2627 = vmatmul.mubr.msk.bf16.vlgmr.msra.gmra.mrb[16].mxu1 %vm996_vm2, %v1227_v59  ;;  %v1714_v30 = vpack.c.bf16 %v1710_v19, %v1710_v19  ;;  %v1715_v31 = vpack.c.bf16 %v1711_v21, %v1711_v21 }
 0x3ea   :  { %v1572_v6 = vcombine.low %v439_v62, %v446_v63  ;;  %v2499_v7 = vcombine.high %v439_v62, %v446_v63  ;;  %v1588_v8 = vcombine.low %v455_v1, %v462_v2  ;;  %v2500_v9 = vcombine.high %v455_v1, %v462_v2  ;;  %2637 = vmatpush3.bf16.xpose.msra.mxu1 %v1794_v4 }
 0x3eb   :  { %v1228_v10 = vpack.c.bf16 %v1224_v3, %v1224_v3  ;;  %2638 = vmatprep.mubr.msk.bf16.mxu1 %vm2941_vm0, %v2940_v0  ;;  %2648 = vmatprep.subr.bf16.mxu1 %v2940_v0  ;;  %v1886_v36 = vsel %vm996_vm2, %v1714_v30, 0  ;;  %v1932_v57 = vsel %vm996_vm2, %v1715_v31, 0 }
 0x3ec   :  { %v1579_v25 = vrot.slane %v1572_v6, %v3117_v40  ;;  %v1587_v11 = vrot.slane %v2499_v7, %v3117_v40  ;;  %v1595_v14 = vrot.slane %v1588_v8, %v3117_v40  ;;  %v1603_v15 = vrot.slane %v2500_v9, %v3117_v40 }
 0x3ed   :  { %1233 = vst.msk [vmem:[#allocation12 + $0xc] sm:$0xf] %vm1229_vm4, %v1228_v10  ;;  %2633 = vmatmul.mubr.msk.bf16.vlgmr.msra.gmra.mrb[20].mxu0 %vm996_vm2, %v1228_v10  ;;  %v1789_v10 = vld [vmem:[#allocation8 + $0x8] sm:$0xff] }
 0x3ee   :  { %v1604_v17 = vcombine.low %v1579_v25, %v1587_v11  ;;  %v1620_v18 = vcombine.low %v1595_v14, %v1603_v15  ;;  %2643 = vmatpush3.bf16.xpose.msra.mxu0 %v1840_v16  ;;  %2644 = vmatprep.mubr.msk.bf16.mxu0 %vm2941_vm0, %v2940_v0  ;;  %v1605_v22 = vcombine.high %v1579_v25, %v1587_v11 }
 0x3ef   :  { %2654 = vmatprep.subr.bf16.mxu0 %v2940_v0  ;;  %v1621_v23 = vcombine.high %v1595_v14, %v1603_v15 }
 0x3f0   :  { %v1612_v26 = vrot.slane %v1604_v17, %v3119_v47  ;;  %v1628_v27 = vrot.slane %v1620_v18, %v3119_v47  ;;  %v1619_v34 = vrot.slane %v1605_v22, %v3119_v47 }
 0x3f1   :  { %v1635_v35 = vrot.slane %v1621_v23, %v3119_v47 }
 0x3f2   :  { %v1636_v28 = vcombine.low %v1612_v26, %v1628_v27  ;;  %v1637_v29 = vcombine.high %v1612_v26, %v1628_v27 }
 0x3f3   :  { %v1638_v37 = vcombine.low %v1619_v34, %v1635_v35  ;;  %v1639_v61 = vcombine.high %v1619_v34, %v1635_v35 }
 0x3f4   :  { %v1640_v32 = vpack.c.bf16 %v1636_v28, %v1636_v28  ;;  %v1641_v33 = vpack.c.bf16 %v1637_v29, %v1637_v29 }
 0x3f5   :  { %v1642_v38 = vpack.c.bf16 %v1638_v37, %v1638_v37  ;;  %v1643_v39 = vpack.c.bf16 %v1639_v61, %v1639_v61 }
 0x3f6   :  { %2639 = vmatmul.mubr.msk.bf16.vlgmr.msra.gmra.mrb[20].mxu1 %vm996_vm2, %v1640_v32  ;;  %2645 = vmatmul.mubr.msk.bf16.vlgmr.msra.gmra.mrb[24].mxu0 %vm996_vm2, %v1641_v33 }
 0x3f7   :  { %2649 = vmatpush3.bf16.xpose.msra.mxu1 %v1886_v36  ;;  %2655 = vmatpush3.bf16.xpose.msra.mxu0 %v1932_v57 }
 0x3f8   :  { %2650 = vmatprep.mubr.msk.bf16.mxu1 %vm2941_vm0, %v2940_v0  ;;  %2656 = vmatprep.mubr.msk.bf16.mxu0 %vm2941_vm0, %v2940_v0 }
 0x3f9   :  { %2660 = vmatprep.subr.bf16.mxu1 %v2940_v0  ;;  %2666 = vmatprep.subr.bf16.mxu0 %v2940_v0 }
 0x3fe   :  { %2651 = vmatmul.mubr.msk.bf16.vlgmr.msra.gmra.mrb[24].mxu1 %vm996_vm2, %v1642_v38  ;;  %2657 = vmatmul.mubr.msk.bf16.vlgmr.msra.gmra.mrb[28].mxu0 %vm996_vm2, %v1643_v39 }
 0x3ff   :  { %2662 = vmatprep.mubr.msk.bf16.mxu1 %vm2941_vm0, %v2940_v0  ;;  %2668 = vmatprep.mubr.msk.bf16.mxu0 %vm2941_vm0, %v2940_v0 }
 0x4b3   :  { %v1275_v41 = vpop.f32.mrb[12].mxu1 }
 0x4b4   :  { %v1321_v42 = vpop.f32.mrb[16].mxu0  ;;  %v2616_v43 = vpop.f32.mrb[13].mxu1 }
 0x4b5   :  { %v2622_v24 = vpop.f32.mrb[17].mxu0  ;;  %v1278_v44 = vpop.f32.mrb[14].mxu1 }
 0x4b6   :  { %v1324_v45 = vpop.f32.mrb[18].mxu0  ;;  %v2617_v46 = vpop.f32.mrb[15].mxu1 }
 0x4b7   :  { %v2623_v48 = vpop.f32.mrb[19].mxu0 }
 0x4bc   :  { %v1367_v49 = vpop.f32.mrb[16].mxu1 }
 0x4bd   :  { %v1419_v50 = vcombine.low %v1275_v41, %v1367_v49  ;;  %v1420_v51 = vcombine.high %v1275_v41, %v1367_v49  ;;  %v2628_v52 = vpop.f32.mrb[17].mxu1 }
 0x4be   :  { %v1370_v53 = vpop.f32.mrb[18].mxu1 }
 0x4bf   :  { %v2629_v54 = vpop.f32.mrb[19].mxu1  ;;  %v1427_v60 = vrot.slane %v1419_v50, %v3117_v40  ;;  %v1434_v62 = vrot.slane %v1420_v51, %v3117_v40 }
 0x4c0   :  { %v1413_v55 = vpop.f32.mrb[20].mxu0 }
 0x4c1   :  { %v1435_v56 = vcombine.low %v1321_v42, %v1413_v55  ;;  %v1436_v58 = vcombine.high %v1321_v42, %v1413_v55  ;;  %v2634_v59 = vpop.f32.mrb[21].mxu0 }
 0x4c2   :  { %v1416_v13 = vpop.f32.mrb[22].mxu0 }
 0x4c3   :  { %v1443_v63 = vrot.slane %v1435_v56, %v3117_v40  ;;  %v1450_v1 = vrot.slane %v1436_v58, %v3117_v40  ;;  %v2635_v2 = vpop.f32.mrb[23].mxu0 }
 0x4c5   :  { %v1451_v3 = vcombine.low %v1427_v60, %v1443_v63  ;;  %v1452_v4 = vcombine.high %v1427_v60, %v1443_v63  ;;  %v1467_v5 = vcombine.low %v1434_v62, %v1450_v1  ;;  %v1468_v20 = vcombine.high %v1434_v62, %v1450_v1 }
 0x4c7   :  { %v1459_v6 = vrot.slane %v1451_v3, %v3119_v47  ;;  %v1466_v7 = vrot.slane %v1452_v4, %v3119_v47  ;;  %v1475_v8 = vrot.slane %v1467_v5, %v3119_v47  ;;  %v1482_v9 = vrot.slane %v1468_v20, %v3119_v47 }
 0x4c9   :  { %v1487_v25 = vcombine.low %v1459_v6, %v1466_v7  ;;  %v2497_v11 = vcombine.high %v1459_v6, %v1466_v7  ;;  %v1503_v14 = vcombine.low %v1475_v8, %v1482_v9  ;;  %v2498_v15 = vcombine.high %v1475_v8, %v1482_v9  ;;  %v1830_v16 = vpop.f32.mrb[20].mxu1  ;;  %v1876_v17 = vpop.f32.mrb[24].mxu0 }
 0x4ca   :  { %v1831_v18 = vadd.f32 %v1830_v16, %v1789_v10  ;;  %v1877_v19 = vadd.f32 %v1876_v17, %v1789_v10  ;;  %v2640_v21 = vpop.f32.mrb[21].mxu1  ;;  %v2646_v22 = vpop.f32.mrb[25].mxu0 }
 0x4cb   :  { %v1494_v23 = vrot.slane %v1487_v25, %v3117_v40  ;;  %v1502_v26 = vrot.slane %v2497_v11, %v3117_v40  ;;  %v1510_v27 = vrot.slane %v1503_v14, %v3117_v40  ;;  %v1518_v28 = vrot.slane %v2498_v15, %v3117_v40  ;;  %v1833_v29 = vpop.f32.mrb[22].mxu1  ;;  %v1879_v30 = vpop.f32.mrb[26].mxu0 }
 0x4cc   :  { %v2641_v31 = vpop.f32.mrb[23].mxu1  ;;  %v2647_v32 = vpop.f32.mrb[27].mxu0  ;;  %v1974_v33 = vsel %vm996_vm2, %v1831_v18, -inf  ;;  %v1977_v34 = vsel %vm996_vm2, %v1877_v19, -inf }
 0x4cd   :  { %1975 = vmax.xlane.f32.xlu1 %v1974_v33  ;;  %1978 = vmax.xlane.f32.xlu0 %v1977_v34  ;;  %v1520_v35 = vcombine.high %v1494_v23, %v1502_v26  ;;  %v1536_v36 = vcombine.high %v1510_v27, %v1518_v28  ;;  %v1519_v57 = vcombine.low %v1494_v23, %v1502_v26 }
 0x4ce   :  { %v1535_v37 = vcombine.low %v1510_v27, %v1518_v28 }
 0x4cf   :  { %v3344_v61 = vrot.slane %v1520_v35, %v3119_v47  ;;  %v3347_v38 = vrot.slane %v1536_v36, %v3119_v47  ;;  %v3350_v39 = vrot.slane %v1519_v57, %v3119_v47 }
 0x4d0   :  { %v3353_v41 = vrot.slane %v1535_v37, %v3119_v47 }
 0x4d1   :  { %v1922_v42 = vpop.f32.mrb[24].mxu1  ;;  %v1968_v43 = vpop.f32.mrb[28].mxu0  ;;  %v1553_v24 = vcombine.low %v3344_v61, %v3347_v38  ;;  %v1554_v44 = vcombine.high %v3344_v61, %v3347_v38 }
 0x4d2   :  { %v1923_v45 = vadd.f32 %v1922_v42, %v1789_v10  ;;  %v1969_v46 = vadd.f32 %v1968_v43, %v1789_v10  ;;  %v2652_v48 = vpop.f32.mrb[25].mxu1  ;;  %v2658_v49 = vpop.f32.mrb[29].mxu0  ;;  %v1551_v50 = vcombine.low %v3350_v39, %v3353_v41  ;;  %v1552_v51 = vcombine.high %v3350_v39, %v3353_v41 }
 0x4d3   :  { %v1925_v52 = vpop.f32.mrb[26].mxu1  ;;  %v1971_v53 = vpop.f32.mrb[30].mxu0 }
 0x4d4   :  { %v2653_v54 = vpop.f32.mrb[27].mxu1  ;;  %v2659_v55 = vpop.f32.mrb[31].mxu0  ;;  %v1980_v56 = vsel %vm996_vm2, %v1923_v45, -inf  ;;  %v1983_v58 = vsel %vm996_vm2, %v1969_v46, -inf }
 0x4d5   :  { %1981 = vmax.xlane.f32.xlu0 %v1980_v56  ;;  %1984 = vmax.xlane.f32.xlu1 %v1983_v58 }
 0x4e6   :  { %633 = vrot.lane.b32.xlu1 %v3176_v12, %s2944_s22 }
 0x55a   :  { %v1976_v59 = vpop.xlane.xlu1 %1975  ;;  %v1979_v13 = vpop.xlane.xlu0 %1978 }
 0x55b   :  { %v1986_v60 = vsub.f32 %v1831_v18, %v1976_v59  ;;  %v1987_v62 = vsub.f32 %v1877_v19, %v1979_v13 }
 0x55d   :  { %v1990_v63 = vmul.f32 1.442695, %v1986_v60  ;;  %v1992_v1 = vmul.f32 1.442695, %v1987_v62 }
 0x55f   :  { %2751 = vpow2.f32 %v1990_v63 }
 0x560   :  { %2753 = vpow2.f32 %v1992_v1 }
 0x562   :  { %v1982_v20 = vpop.xlane.xlu0 %1981  ;;  %v1985_v6 = vpop.xlane.xlu1 %1984 }
 0x563   :  { %v1988_v7 = vsub.f32 %v1923_v45, %v1982_v20  ;;  %v1989_v8 = vsub.f32 %v1969_v46, %v1985_v6 }
 0x565   :  { %v1994_v9 = vmul.f32 1.442695, %v1988_v7  ;;  %v1996_v10 = vmul.f32 1.442695, %v1989_v8 }
 0x566   :  { %v634_v16 = vpop.permute.xlu1 %633 }
 0x567   :  { %2755 = vpow2.f32 %v1994_v9  ;;  %v711_v19 = vcombine.low %v3176_v12, %v634_v16  ;;  %v712_v21 = vcombine.high %v3176_v12, %v634_v16 }
 0x568   :  { %2757 = vpow2.f32 %v1996_v10 }
 0x569   :  { %v2752_v2 = vpop.eup %2751  ;;  %v719_v28 = vrot.slane %v711_v19, %v3117_v40  ;;  %v726_v29 = vrot.slane %v712_v21, %v3117_v40 }
 0x56a   :  { %v2754_v3 = vpop.eup %2753  ;;  %v1998_v4 = vsel %vm996_vm2, %v2752_v2, 0.0 }
 0x56b   :  { %1999 = vadd.xlane.f32.xlu0 %v1998_v4  ;;  %v2001_v5 = vsel %vm996_vm2, %v2754_v3, 0.0 }
 0x56c   :  { %2002 = vadd.xlane.f32.xlu1 %v2001_v5 }
 0x571   :  { %v3373_v25 = vpop.eup %2755 }
 0x572   :  { %v3375_v11 = vpop.eup %2757  ;;  %v2004_v14 = vsel %vm996_vm2, %v3373_v25, 0.0 }
 0x573   :  { %v2007_v15 = vsel %vm996_vm2, %v3375_v11, 0.0 }
 0x57d   :  { %639 = vrot.lane.b32.xlu1 %v3176_v12, %s2942_s20 }
 0x581   :  { %627 = vrot.lane.b32.xlu0 %v3176_v12, %s2943_s21 }
 0x5a0   :  { %2005 = vadd.xlane.f32.xlu0 %v2004_v14 }
 0x5a1   :  { %2008 = vadd.xlane.f32.xlu1 %v2007_v15 }
 0x5f8   :  { %v2000_v17 = vpop.xlane.xlu0 %1999 }
 0x5f9   :  { %2759 = vrcp.f32 %v2000_v17  ;;  %v2003_v18 = vpop.xlane.xlu1 %2002 }
 0x5fa   :  { %2761 = vrcp.f32 %v2003_v18 }
 0x5fc   :  { %v628_v22 = vpop.permute.xlu0 %627 }
 0x5fd   :  { %v640_v23 = vpop.permute.xlu1 %639 }
 0x5fe   :  { %v727_v26 = vcombine.low %v628_v22, %v640_v23  ;;  %v728_v27 = vcombine.high %v628_v22, %v640_v23 }
 0x600   :  { %v735_v30 = vrot.slane %v727_v26, %v3117_v40  ;;  %v742_v31 = vrot.slane %v728_v27, %v3117_v40 }
 0x602   :  { %v743_v32 = vcombine.low %v719_v28, %v735_v30  ;;  %v744_v33 = vcombine.high %v719_v28, %v735_v30  ;;  %v759_v34 = vcombine.low %v726_v29, %v742_v31  ;;  %v760_v35 = vcombine.high %v726_v29, %v742_v31 }
 0x603   :  { %v2760_v36 = vpop.eup %2759 }
 0x604   :  { %v2762_v57 = vpop.eup %2761  ;;  %v2014_v37 = vmul.f32 %v2760_v36, %v2752_v2  ;;  %v751_v12 = vrot.slane %v743_v32, %v3119_v47  ;;  %v758_v42 = vrot.slane %v744_v33, %v3119_v47  ;;  %v767_v43 = vrot.slane %v759_v34, %v3119_v47 }
 0x605   :  { %v2015_v45 = vmul.f32 %v2762_v57, %v2754_v3  ;;  %v774_v46 = vrot.slane %v760_v35, %v3119_v47 }
 0x606   :  { %v1716_v48 = vcombine.low %v751_v12, %v758_v42  ;;  %v2503_v49 = vcombine.high %v751_v12, %v758_v42  ;;  %v2018_v52 = vpack.c.bf16 %v2014_v37, %v2014_v37 }
 0x607   :  { %v1732_v53 = vcombine.low %v767_v43, %v774_v46  ;;  %v2504_v54 = vcombine.high %v767_v43, %v774_v46  ;;  %v2019_v55 = vpack.c.bf16 %v2015_v45, %v2015_v45 }
 0x608   :  { %v1723_v56 = vrot.slane %v1716_v48, %v3117_v40  ;;  %v1731_v58 = vrot.slane %v2503_v49, %v3117_v40  ;;  %2023 = vst.msk [vmem:[#allocation12 + $0x10] sm:$0xf] %vm1229_vm4, %v2018_v52 }
 0x609   :  { %v1739_v59 = vrot.slane %v1732_v53, %v3117_v40  ;;  %v1747_v13 = vrot.slane %v2504_v54, %v3117_v40  ;;  %2024 = vst.msk [vmem:[#allocation12 + $0x14] sm:$0xf] %vm1229_vm4, %v2019_v55 }
 0x60a   :  { %v1748_v60 = vcombine.low %v1723_v56, %v1731_v58  ;;  %v1749_v62 = vcombine.high %v1723_v56, %v1731_v58 }
 0x60b   :  { %v1764_v63 = vcombine.low %v1739_v59, %v1747_v13  ;;  %v1765_v1 = vcombine.high %v1739_v59, %v1747_v13 }
 0x60c   :  { %v1756_v2 = vrot.slane %v1748_v60, %v3119_v47  ;;  %v1763_v3 = vrot.slane %v1749_v62, %v3119_v47 }
 0x60d   :  { %v1772_v4 = vrot.slane %v1764_v63, %v3119_v47  ;;  %v1779_v5 = vrot.slane %v1765_v1, %v3119_v47 }
 0x60f   :  { %v1780_v20 = vcombine.low %v1756_v2, %v1772_v4  ;;  %v1781_v6 = vcombine.high %v1756_v2, %v1772_v4  ;;  %v1782_v7 = vcombine.low %v1763_v3, %v1779_v5  ;;  %v1783_v8 = vcombine.high %v1763_v3, %v1779_v5 }
 0x611   :  { %v1784_v9 = vpack.c.bf16 %v1780_v20, %v1780_v20  ;;  %v1785_v10 = vpack.c.bf16 %v1781_v6, %v1781_v6  ;;  %v1786_v16 = vpack.c.bf16 %v1782_v7, %v1782_v7  ;;  %v1787_v17 = vpack.c.bf16 %v1783_v8, %v1783_v8  ;;  %v2733_v8 = vld [vmem:[#allocation10 + $0x30] sm:$0xff]  }
 0x613   :  { %v2031_v14 = vsel %vm1237_vm3, %v1784_v9, 0  ;;  %v2077_v15 = vsel %vm1237_vm3, %v1785_v10, 0  ;;  %v2123_v18 = vsel %vm1237_vm3, %v1786_v16, 0  ;;  %v2169_v19 = vsel %vm1237_vm3, %v1787_v17, 0 }
 0x614   :  { %2661 = vmatpush3.bf16.msra.mxu1 %v2031_v14  ;;  %2667 = vmatpush3.bf16.msra.mxu0 %v2077_v15 }
 0x615   :  { %2672 = vmatprep.subr.bf16.mxu1 %v2940_v0  ;;  %2678 = vmatprep.subr.bf16.mxu0 %v2940_v0 }
 0x617   :  { %2663 = vmatmul.mubr.msk.bf16.vlgmr.msra.gmra.mrb[28].mxu1 %vm996_vm2, %v2018_v52  ;;  %2669 = vmatmul.mubr.msk.bf16.vlgmr.msra.gmra.mrb[32].mxu0 %vm996_vm2, %v2019_v55 }
 0x618   :  { %2673 = vmatpush3.bf16.msra.mxu1 %v2123_v18  ;;  %2679 = vmatpush3.bf16.msra.mxu0 %v2169_v19 }
 0x619   :  { %2674 = vmatprep.mubr.msk.bf16.mxu1 %vm2941_vm0, %v2940_v0  ;;  %2680 = vmatprep.mubr.msk.bf16.mxu0 %vm2941_vm0, %v2940_v0 }
 0x61a   :  { %2684 = vmatprep.subr.bf16.mxu1 %v2940_v0 }
 0x62d   :  { %v2006_v21 = vpop.xlane.xlu0 %2005 }
 0x62e   :  { %2763 = vrcp.f32 %v2006_v21  ;;  %v2009_v22 = vpop.xlane.xlu1 %2008  ;;  %v2734_v21 = vld [vmem:[#allocation10 + $0x38] sm:$0xff]  }
 0x62f   :  { %2765 = vrcp.f32 %v2009_v22 }
 0x638   :  { %v2764_v23 = vpop.eup %2763 }
 0x639   :  { %v2766_v26 = vpop.eup %2765  ;;  %v2016_v27 = vmul.f32 %v2764_v23, %v3373_v25 }
 0x63a   :  { %v2017_v28 = vmul.f32 %v2766_v26, %v3375_v11 }
 0x63b   :  { %v2020_v29 = vpack.c.bf16 %v2016_v27, %v2016_v27 }
 0x63c   :  { %v2021_v30 = vpack.c.bf16 %v2017_v28, %v2017_v28 }
 0x63d   :  { %2025 = vst.msk [vmem:[#allocation12 + $0x18] sm:$0xf] %vm1229_vm4, %v2020_v29  ;;  %2675 = vmatmul.mubr.msk.bf16.vlgmr.msra.gmra.mrb[32].mxu1 %vm996_vm2, %v2020_v29 }
 0x63e   :  { %2026 = vst.msk [vmem:[#allocation12 + $0x1c] sm:$0xf] %vm1229_vm4, %v2021_v30  ;;  %2681 = vmatmul.mubr.msk.bf16.vlgmr.msra.gmra.mrb[36].mxu0 %vm996_vm2, %v2021_v30  ;;  %2688 = vmatprep.mubr.msk.bf16.mxu1 %vm2941_vm0, %v2940_v0 }
 0x63f   :  { %2685 = vmatpush3.bf16.msra.mxu1 %v2733_v8 }
 0x640   :  { %2686 = vmatprep.subr.bf16.mxu1 %v2940_v0 }
 0x643   :  { %2687 = vmatpush3.bf16.msra.mxu1 %v2734_v21 }
 0x6ea   :  { %v2067_v31 = vpop.f32.mrb[28].mxu1  ;;  %v2113_v32 = vpop.f32.mrb[32].mxu0 }
 0x6eb   :  { %v2664_v33 = vpop.f32.mrb[29].mxu1  ;;  %v2670_v34 = vpop.f32.mrb[33].mxu0 }
 0x6ec   :  { %v2070_v25 = vpop.f32.mrb[30].mxu1  ;;  %v2116_v35 = vpop.f32.mrb[34].mxu0 }
 0x6ed   :  { %v2665_v11 = vpop.f32.mrb[31].mxu1  ;;  %v2671_v36 = vpop.f32.mrb[35].mxu0 }
 0x710   :  { %v2159_v57 = vpop.f32.mrb[32].mxu1 }
 0x711   :  { %v2211_v37 = vcombine.low %v2067_v31, %v2159_v57  ;;  %v2212_v12 = vcombine.high %v2067_v31, %v2159_v57  ;;  %v2205_v42 = vpop.f32.mrb[36].mxu0  ;;  %v2676_v43 = vpop.f32.mrb[33].mxu1 }
 0x712   :  { %v2227_v45 = vcombine.low %v2113_v32, %v2205_v42  ;;  %v2228_v46 = vcombine.high %v2113_v32, %v2205_v42  ;;  %v2682_v48 = vpop.f32.mrb[37].mxu0  ;;  %v2162_v49 = vpop.f32.mrb[34].mxu1 }
 0x713   :  { %v2219_v52 = vrot.slane %v2211_v37, %v3117_v40  ;;  %v2226_v53 = vrot.slane %v2212_v12, %v3117_v40  ;;  %v2208_v54 = vpop.f32.mrb[38].mxu0  ;;  %v2677_v55 = vpop.f32.mrb[35].mxu1 }
 0x714   :  { %v2235_v56 = vrot.slane %v2227_v45, %v3117_v40  ;;  %v2242_v58 = vrot.slane %v2228_v46, %v3117_v40  ;;  %v2683_v59 = vpop.f32.mrb[39].mxu0 }
 0x716   :  { %v2243_v13 = vcombine.low %v2219_v52, %v2235_v56  ;;  %v2244_v60 = vcombine.high %v2219_v52, %v2235_v56  ;;  %v2259_v62 = vcombine.low %v2226_v53, %v2242_v58  ;;  %v2260_v63 = vcombine.high %v2226_v53, %v2242_v58 }
 0x718   :  { %v2251_v1 = vrot.slane %v2243_v13, %v3119_v47  ;;  %v2258_v2 = vrot.slane %v2244_v60, %v3119_v47  ;;  %v2267_v3 = vrot.slane %v2259_v62, %v3119_v47  ;;  %v2274_v4 = vrot.slane %v2260_v63, %v3119_v47 }
 0x71a   :  { %v2279_v5 = vcombine.low %v2251_v1, %v2258_v2  ;;  %v2513_v20 = vcombine.high %v2251_v1, %v2258_v2  ;;  %v2295_v6 = vcombine.low %v2267_v3, %v2274_v4  ;;  %v2514_v7 = vcombine.high %v2267_v3, %v2274_v4 }
 0x71c   :  { %v2286_v9 = vrot.slane %v2279_v5, %v3117_v40  ;;  %v2294_v10 = vrot.slane %v2513_v20, %v3117_v40  ;;  %v2302_v14 = vrot.slane %v2295_v6, %v3117_v40  ;;  %v2310_v15 = vrot.slane %v2514_v7, %v3117_v40 }
 0x71e   :  { %v2312_v16 = vcombine.high %v2286_v9, %v2294_v10  ;;  %v2328_v17 = vcombine.high %v2302_v14, %v2310_v15  ;;  %v2311_v18 = vcombine.low %v2286_v9, %v2294_v10  ;;  %v2327_v19 = vcombine.low %v2302_v14, %v2310_v15 }
 0x720   :  { %v2326_v22 = vrot.slane %v2312_v16, %v3119_v47  ;;  %v2342_v23 = vrot.slane %v2328_v17, %v3119_v47  ;;  %v2319_v26 = vrot.slane %v2311_v18, %v3119_v47  ;;  %v2335_v27 = vrot.slane %v2327_v19, %v3119_v47 }
 0x722   :  { %v2345_v28 = vcombine.low %v2326_v22, %v2342_v23  ;;  %v2344_v29 = vcombine.high %v2319_v26, %v2335_v27  ;;  %v2343_v40 = vcombine.low %v2319_v26, %v2335_v27  ;;  %v2346_v30 = vcombine.high %v2326_v22, %v2342_v23 }
 0x724   :  { %v2717_v0 = vpack.i.bf16 %v2345_v28, %v1553_v24  ;;  %v2712_v31 = vpack.i.bf16 %v2344_v29, %v1552_v51  ;;  %v2722_v32 = vpack.i.bf16 %v2346_v30, %v1554_v44 }
 0x726   :  { %2718 = vrot.lane.b32.xlu1 %v2717_v0, %s2947_s1  ;;  %2713 = vrot.lane.b32.xlu0 %v2712_v31, %s2934_s14 }
 0x72a   :  { %2723 = vrot.lane.b32.xlu0 %v2722_v32, %s2948_s0 }
 0x798   :  { %v2719_v47 = vpop.permute.xlu1 %2718  ;;  %v2714_v33 = vpop.permute.xlu0 %2713 }
 0x799   :  { %v2716_v34 = vunpack.i.h.bf16 %v2714_v33  ;;  %v2715_v25 = vunpack.i.l.bf16 %v2714_v33  ;;  %v2721_v35 = vunpack.i.h.bf16 %v2719_v47  ;;  %v2720_v24 = vunpack.i.l.bf16 %v2719_v47 }
 0x79b   :  { %v1567_v51 = vsel %vm996_vm2, %v1551_v50, %v2715_v25  ;;  %v2359_v61 = vsel %vm996_vm2, %v2343_v40, %v2716_v34 }
 0x79c   :  { %v2724_v38 = vpop.permute.xlu0 %2723  ;;  %v1569_v36 = vsel %vm1568_vm5, %v1567_v51, %v2720_v24  ;;  %v2360_v57 = vsel %vm1568_vm5, %v2359_v61, %v2721_v35 }
 0x79d   :  { %v2726_v44 = vunpack.i.h.bf16 %v2724_v38  ;;  %v2725_v11 = vunpack.i.l.bf16 %v2724_v38 }
 0x79f   :  { %v1571_v37 = vsel %vm1570_vm6, %v1569_v36, %v2725_v11  ;;  %v2361_v12 = vsel %vm1570_vm6, %v2360_v57, %v2726_v44 }
 0x7a0   :  { %v2362_v42 = vpack.c.bf16 %v2361_v12, %v1571_v37 }
 0x7a2   :  { %2689 = vmatmul.mubr.msk.bf16.vlgmr.msra.gmra.mrb[36].mxu1 %vm128_vm1, %v2362_v42 }
 0x7a3   :  { %2888 = shalt.err (!%p2885_p2)
}
 0x7a4   :  { %s2889_s9 = scalar_lea.hbm %s3497_s7, 512 }
 0x7a5   :  { %p2890_p3 = scmp.ne.s32.totalorder %s3497_s7, %s2889_s9  ;;  %p2893_p4 = scmp.lt.u32.totalorder %s2889_s9, %s3497_s7 }
 0x7a7   :  { %p2895_p5 = pnand %p2893_p4, %p2890_p3 }
 0x7a9   :  { %2898 = shalt.err (!%p2895_p5)
}
 0x7aa   :  { %2457 = dma.vmem_to_hbm [thread:$0]  %s2452_s26, 512, %s3497_s7, [#allocation13], %s2938_s2, %s2938_s2, %s2939_s30  }
 0x7ab   :  { %v2516_v39 = vld [vmem:[%s3495_s5 + $0x3] ss:$0 sm:$0xff]  ;;  %s2950_s17 = smov [#allocation11]  }
 0x7ac   :  { %s2439_s18 = sshll.u32 %s2950_s17, 4  ;;  %s2440_s18 = int_to_ptr.vmem [resolvable:$true] %s2439_s18 }
 0x7ad   :  { %s2899_s19 = scalar_lea.vmem %s2440_s18, 256  ;;  %p2904_p7 = scmp.lt.s32.totalorder %s2440_s18, %s2440_s18 }
 0x7ae   :  { %p2900_p6 = scmp.ne.s32.totalorder %s2440_s18, %s2899_s19  ;;  %p2905_p8 = scmp.lt.s32.totalorder %s2899_s19, %s2899_s19 }
 0x7b0   :  { %p2906_p9 = por %p2905_p8, %p2904_p7 }
 0x7b2   :  { %p2907_p10 = pnand %p2906_p9, %p2900_p6 }
 0x875   :  { %v2425_v41 = vpop.f32.mrb[36].mxu1 }
 0x876   :  { %v2426_v50 = vadd.f32 %v2516_v39, %v2425_v41  ;;  %v2690_v43 = vpop.f32.mrb[37].mxu1 }
 0x877   :  { %v2428_v45 = vpop.f32.mrb[38].mxu1 }
 0x878   :  { %2432 = vst.msk [vmem:[#allocation11] sm:$0xff] %vm128_vm1, %v2426_v50  ;;  %v2429_v46 = vadd.f32 %v2516_v39, %v2428_v45  ;;  %v2691_v48 = vpop.f32.mrb[39].mxu1 }
 0x87a   :  { %2433 = vst.msk [vmem:[#allocation11 + $0x8] sm:$0xff] %vm128_vm1, %v2429_v46 }
 0x87b   :  { %2910 = shalt.err (!%p2907_p10)
}
 0x87c   :  { %s2911_s2 = scalar_lea.hbm %s3496_s6, 256 }
 0x87d   :  { %p2912_p11 = scmp.ne.s32.totalorder %s3496_s6, %s2911_s2  ;;  %p2915_p12 = scmp.lt.u32.totalorder %s2911_s2, %s3496_s6 }
 0x87f   :  { %p2917_p13 = pnand %p2915_p12, %p2912_p11 }
 0x881   :  { %2920 = shalt.err (!%p2917_p13)
}
 0x882   :  { %2445 = dma.vmem_to_hbm [thread:$0]  %s2440_s18, 256, %s3496_s6, [#allocation4], %s2933_s13, %s2933_s13, %s2934_s14  }
 0x883   :  { %2927 = dma.done.wait [#allocation4], 256  }
 0x884   :  { %2928 = vsyncadd [#allocation4], 4294967040 }
 0x885   :  { %2929 = dma.done.wait [#allocation13], 512  }
 0x886   :  { %2930 = vsyncadd [#allocation13], 4294966784 }
 0x887   :  { %2464 = vsyncpa [#allocation3], 1 }
 0x888   :  { %2465 = vsyncpa [#allocation6], 1 }
 0x889   :  { %2466 = vsyncpa [#allocation9], 1 }
 0x88a   :  { %2467 = vsyncpa [#allocation4], 1 }
 0x88b   :  { %2468 = vsyncpa [#allocation13], 1 }

</bundles_post_ra>
